<compile_context>
chip_gen: v7x
topology: tpu7x:2x2x1
jax: 0.10.0
libtpu: 0.0.40
codegen_flags: <defaults>
</compile_context>

<pallas_src>
import jax
import jax.numpy as jnp
from jax.experimental import pallas as pl
from jax.experimental.pallas import tpu as pltpu

IN_FEATURES = 3072
H1 = 256
H2 = 128
NUM_CLASSES = 10
C_PAD = 128          # lane-dense padded class dim (one MXU pass either way)
NEG_LARGE = -1e30    # mask value for padded logit columns


def _round_up(n, m):
    return ((n + m - 1) // m) * m


def mlp_kernel(x_ref, w1_ref, w2_ref, w3_ref, o_ref):
    # x_ref : (tb, 3072) f32 (or bf16)   w1_ref: (3072, 256) bf16
    # w2_ref: (256, 128) bf16            w3_ref: (128, 128) bf16 (cols>=10 zero)
    # o_ref : (tb, 128) f32
    x = x_ref[...].astype(jnp.bfloat16)  # no-op if caller already passes bf16

    # fc1 + Identity(norm1) + ReLU   (bf16 operands, f32 MXU accumulation)
    h1 = jnp.dot(x, w1_ref[...], preferred_element_type=jnp.float32)
    h1 = jnp.maximum(h1, 0.0).astype(jnp.bfloat16)

    # fc2 + Identity(norm2) + ReLU
    h2 = jnp.dot(h1, w2_ref[...], preferred_element_type=jnp.float32)
    h2 = jnp.maximum(h2, 0.0).astype(jnp.bfloat16)

    # fc3 + Identity(norm3)  -> lane-dense (tb, 128) logits
    logits = jnp.dot(h2, w3_ref[...], preferred_element_type=jnp.float32)

    # Mask the padded class columns so they cannot perturb the log-softmax.
    col = jax.lax.broadcasted_iota(jnp.int32, logits.shape, 1)
    logits = jnp.where(col < NUM_CLASSES, logits, jnp.float32(NEG_LARGE))

    # log_softmax over the class dim, f32 epilogue (row-wise only).
    m = jnp.max(logits, axis=1, keepdims=True)
    shifted = logits - m
    lse = jnp.log(jnp.sum(jnp.exp(shifted), axis=1, keepdims=True))
    o_ref[...] = (shifted - lse).astype(o_ref.dtype)


def prepare_params(w1, w2, w3):
    """One-time, outside the hot path: PyTorch (out, in) -> (in, out), bf16.
    w3 is zero-padded along the class dim to 128 for a lane-dense output."""
    w1_t = jnp.asarray(w1).T.astype(jnp.bfloat16)                 # (3072, 256)
    w2_t = jnp.asarray(w2).T.astype(jnp.bfloat16)                 # (256, 128)
    w3_t = jnp.asarray(w3).T.astype(jnp.bfloat16)                 # (128, 10)
    w3_t = jnp.pad(w3_t, ((0, 0), (0, C_PAD - NUM_CLASSES)))      # (128, 128)
    return w1_t, w2_t, w3_t


def classifier_forward(x_nchw, w1_t, w2_t, w3_t, *, max_tile_b=512):
    """x_nchw: (B, 3, 32, 32) f32 (bf16 accepted).  w*_t from prepare_params.
    Returns log-probabilities of shape (B, 10), f32."""
    B = x_nchw.shape[0]
    x_flat = x_nchw.reshape(B, IN_FEATURES)

    # Batch tile: multiple of 8 (sublane).  No jnp.pad: the ragged last tile is
    # handled by Pallas' masked edge blocks (row-wise epilogue keeps it safe).
    tb = min(max_tile_b, _round_up(B, 8))
    num_tiles = pl.cdiv(B, tb)
    b_eff = num_tiles * tb

    flops = 2 * b_eff * (IN_FEATURES * H1 + H1 * H2 + H2 * C_PAD)
    bytes_accessed = (b_eff * IN_FEATURES * x_flat.dtype.itemsize
                      + (IN_FEATURES * H1 + H1 * H2 + H2 * C_PAD) * 2
                      + b_eff * C_PAD * 4)

    out = pl.pallas_call(
        mlp_kernel,
        out_shape=jax.ShapeDtypeStruct((B, C_PAD), jnp.float32),
        grid=(num_tiles,),
        in_specs=[
            pl.BlockSpec((tb, IN_FEATURES), lambda i: (i, 0)),
            # Constant block index => weights DMA'd once, VMEM-resident across
            # all batch tiles.
            pl.BlockSpec((IN_FEATURES, H1), lambda i: (0, 0)),
            pl.BlockSpec((H1, H2), lambda i: (0, 0)),
            pl.BlockSpec((H2, C_PAD), lambda i: (0, 0)),
        ],
        out_specs=pl.BlockSpec((tb, C_PAD), lambda i: (i, 0)),
        compiler_params=pltpu.CompilerParams(
            # Engage both v7x TensorCores as soon as there are 2+ batch tiles
            # (per-core weight re-fetch is only ~1.6 MB); no-op on v5e/v6e.
            dimension_semantics=(("parallel",) if num_tiles >= 2
                                 else ("arbitrary",)),
            # ~20 MiB needed at tb=512; raise above v5e's 16 MiB scoped
            # default while staying under v7x's 64 MiB physical VMEM.
            vmem_limit_bytes=40 * 1024 * 1024),
        cost_estimate=pl.CostEstimate(
            flops=flops,
            transcendentals=b_eff * (C_PAD + 1),
            bytes_accessed=bytes_accessed),
    )(x_flat, w1_t, w2_t, w3_t)
    return out[:, :NUM_CLASSES]


def _init_params(key):
    """Deterministic synthetic weights matching nn.Linear shapes (out, in)."""
    k1, k2, k3 = jax.random.split(key, 3)
    w1 = jax.random.uniform(k1, (H1, IN_FEATURES), jnp.float32, -1.0, 1.0) * (1.0 / IN_FEATURES) ** 0.5
    w2 = jax.random.uniform(k2, (H2, H1), jnp.float32, -1.0, 1.0) * (1.0 / H1) ** 0.5
    w3 = jax.random.uniform(k3, (NUM_CLASSES, H2), jnp.float32, -1.0, 1.0) * (1.0 / H2) ** 0.5
    return w1, w2, w3


def _reference_forward_f32(x_nchw, w1, w2, w3):
    """Pure-JAX f32 reference mirroring the PyTorch forward (bias=False)."""
    x = x_nchw.reshape(x_nchw.shape[0], -1)
    x = jnp.maximum(x @ w1.T, 0.0)
    x = jnp.maximum(x @ w2.T, 0.0)
    return jax.nn.log_softmax(x @ w3.T, axis=1)


def _reference_forward_bf16(x_nchw, w1_t, w2_t, w3_t):
    """Pure-JAX reference with the same bf16-input / f32-accumulate dtype flow."""
    x = x_nchw.reshape(x_nchw.shape[0], -1).astype(jnp.bfloat16)
    h1 = jnp.maximum(jnp.dot(x, w1_t, preferred_element_type=jnp.float32), 0.0).astype(jnp.bfloat16)
    h2 = jnp.maximum(jnp.dot(h1, w2_t, preferred_element_type=jnp.float32), 0.0).astype(jnp.bfloat16)
    logits = jnp.dot(h2, w3_t[:, :NUM_CLASSES], preferred_element_type=jnp.float32)
    return jax.nn.log_softmax(logits, axis=1)


if __name__ == "__main__":
    key = jax.random.PRNGKey(0)
    k_x, k_x2, k_w = jax.random.split(key, 3)

    w1, w2, w3 = _init_params(k_w)
    w1_t, w2_t, w3_t = prepare_params(w1, w2, w3)  # one-time prep, not hot path

    # --- Primary small test: single tile --------------------------------
    B = 8
    x = jax.random.normal(k_x, (B, 3, 32, 32), jnp.float32)  # NCHW, 3*32*32 = 3072
    out = jax.block_until_ready(classifier_forward(x, w1_t, w2_t, w3_t))
    assert out.shape == (B, NUM_CLASSES)
    assert bool(jnp.all(jnp.isfinite(out)))

    # Tight check vs dtype-matched (bf16 in, f32 accum) pure-JAX reference.
    ref_bf16 = _reference_forward_bf16(x, w1_t, w2_t, w3_t)
    assert jnp.allclose(out, ref_bf16, atol=2e-3, rtol=2e-3), "mismatch vs dtype-matched reference"

    # Loose check vs full-f32 PyTorch-equivalent reference (bf16 weight error).
    ref_f32 = _reference_forward_f32(x, w1, w2, w3)
    assert jnp.allclose(out, ref_f32, atol=5e-2, rtol=5e-2), "mismatch vs f32 reference"

    # --- Ragged multi-tile test (masked last block + parallel grid) ------
    B2 = 20
    x2 = jax.random.normal(k_x2, (B2, 3, 32, 32), jnp.float32)
    out2 = jax.block_until_ready(
        classifier_forward(x2, w1_t, w2_t, w3_t, max_tile_b=8))
    assert out2.shape == (B2, NUM_CLASSES)
    assert bool(jnp.all(jnp.isfinite(out2)))
    ref2 = _reference_forward_bf16(x2, w1_t, w2_t, w3_t)
    assert jnp.allclose(out2, ref2, atol=2e-3, rtol=2e-3), "mismatch on ragged batch"

    print("KERNEL_OK")
</pallas_src>

<mosaic_0001>
module attributes {stable_mosaic.version = 11 : i64} {
  func.func @mlp_kernel(%arg0: i32, %arg1: memref<8x3072xf32, #tpu.memory_space<vmem>>, %arg2: memref<3072x256xbf16, #tpu.memory_space<vmem>>, %arg3: memref<256x128xbf16, #tpu.memory_space<vmem>>, %arg4: memref<128x128xbf16, #tpu.memory_space<vmem>>, %arg5: memref<8x128xf32, #tpu.memory_space<vmem>>) attributes {dimension_semantics = [#tpu.dimension_semantics<arbitrary>], iteration_bounds = array<i64: 1>, scalar_prefetch = 0 : i64, scratch_operands = 0 : i64, tpu.core_type = #tpu.core_type<tc>, window_params = [{transform_indices = @transform_0, window_bounds = array<i64: 8, 3072>}, {pipeline_mode = #tpu.pipeline_mode<synchronous>, transform_indices = @transform_1, window_bounds = array<i64: 3072, 256>}, {pipeline_mode = #tpu.pipeline_mode<synchronous>, transform_indices = @transform_2, window_bounds = array<i64: 256, 128>}, {pipeline_mode = #tpu.pipeline_mode<synchronous>, transform_indices = @transform_3, window_bounds = array<i64: 128, 128>}, {transform_indices = @transform_4, window_bounds = array<i64: 8, 128>}]} {
    %c0 = arith.constant 0 : index
    %c0_0 = arith.constant 0 : index
    %0 = vector.load %arg1[%c0, %c0_0] : memref<8x3072xf32, #tpu.memory_space<vmem>>, vector<8x3072xf32>
    %1 = arith.truncf %0 : vector<8x3072xf32> to vector<8x3072xbf16>
    %c0_1 = arith.constant 0 : index
    %c0_2 = arith.constant 0 : index
    %2 = vector.load %arg2[%c0_1, %c0_2] : memref<3072x256xbf16, #tpu.memory_space<vmem>>, vector<3072x256xbf16>
    %cst = arith.constant dense<0.000000e+00> : vector<8x256xf32>
    %3 = tpu.matmul %1, %2, %cst {dimension_numbers = #tpu.dot_dimension_numbers<[1], [0], [0], [1], [0, 0, 1, 1], [], []>} : vector<8x3072xbf16>, vector<3072x256xbf16>, vector<8x256xf32> -> vector<8x256xf32>
    %cst_3 = arith.constant 0.000000e+00 : f32
    %4 = vector.broadcast %cst_3 : f32 to vector<8x256xf32>
    %5 = arith.maximumf %3, %4 : vector<8x256xf32>
    %6 = arith.truncf %5 : vector<8x256xf32> to vector<8x256xbf16>
    %c0_4 = arith.constant 0 : index
    %c0_5 = arith.constant 0 : index
    %7 = vector.load %arg3[%c0_4, %c0_5] : memref<256x128xbf16, #tpu.memory_space<vmem>>, vector<256x128xbf16>
    %cst_6 = arith.constant dense<0.000000e+00> : vector<8x128xf32>
    %8 = tpu.matmul %6, %7, %cst_6 {dimension_numbers = #tpu.dot_dimension_numbers<[1], [0], [0], [1], [0, 0, 1, 1], [], []>} : vector<8x256xbf16>, vector<256x128xbf16>, vector<8x128xf32> -> vector<8x128xf32>
    %cst_7 = arith.constant 0.000000e+00 : f32
    %9 = vector.broadcast %cst_7 : f32 to vector<8x128xf32>
    %10 = arith.maximumf %8, %9 : vector<8x128xf32>
    %11 = arith.truncf %10 : vector<8x128xf32> to vector<8x128xbf16>
    %c0_8 = arith.constant 0 : index
    %c0_9 = arith.constant 0 : index
    %12 = vector.load %arg4[%c0_8, %c0_9] : memref<128x128xbf16, #tpu.memory_space<vmem>>, vector<128x128xbf16>
    %cst_10 = arith.constant dense<0.000000e+00> : vector<8x128xf32>
    %13 = tpu.matmul %11, %12, %cst_10 {dimension_numbers = #tpu.dot_dimension_numbers<[1], [0], [0], [1], [0, 0, 1, 1], [], []>} : vector<8x128xbf16>, vector<128x128xbf16>, vector<8x128xf32> -> vector<8x128xf32>
    %14 = tpu.iota {dimensions = array<i32: 1>} : vector<8x128xi32>
    %c10_i32 = arith.constant 10 : i32
    %15 = vector.broadcast %c10_i32 : i32 to vector<8x128xi32>
    %16 = arith.cmpi slt, %14, %15 : vector<8x128xi32>
    %cst_11 = arith.constant -1.000000e+30 : f32
    %17 = vector.broadcast %cst_11 : f32 to vector<8x128xf32>
    %18 = arith.select %16, %13, %17 : vector<8x128xi1>, vector<8x128xf32>
    %cst_12 = arith.constant dense<0xFF800000> : vector<8xf32>
    %19 = vector.multi_reduction <maximumf>, %18, %cst_12 [1] : vector<8x128xf32> to vector<8xf32>
    %20 = vector.shape_cast %19 : vector<8xf32> to vector<8x1xf32>
    %21 = vector.broadcast %20 : vector<8x1xf32> to vector<8x128xf32>
    %22 = arith.subf %18, %21 : vector<8x128xf32>
    %23 = math.exp %22 : vector<8x128xf32>
    %cst_13 = arith.constant dense<0.000000e+00> : vector<8xf32>
    %24 = vector.multi_reduction <add>, %23, %cst_13 [1] : vector<8x128xf32> to vector<8xf32>
    %25 = vector.shape_cast %24 : vector<8xf32> to vector<8x1xf32>
    %26 = math.log %25 : vector<8x1xf32>
    %27 = vector.broadcast %26 : vector<8x1xf32> to vector<8x128xf32>
    %28 = arith.subf %22, %27 : vector<8x128xf32>
    %c0_14 = arith.constant 0 : index
    %c0_15 = arith.constant 0 : index
    %29 = vector.load %arg5[%c0_14, %c0_15] : memref<8x128xf32, #tpu.memory_space<vmem>>, vector<8x128xf32>
    tpu.vector_store %arg5[%c0_14, %c0_15], %28 {strides = array<i32>} : memref<8x128xf32, #tpu.memory_space<vmem>>, vector<8x128xf32>,
    return
  }
  func.func @transform_0(%arg0: i32) -> (i32, i32) {
    %c0_i32 = arith.constant 0 : i32
    %c0_i32_0 = arith.constant 0 : i32
    return %arg0, %c0_i32 : i32, i32
  }
  func.func @transform_1(%arg0: i32) -> (i32, i32) {
    %c0_i32 = arith.constant 0 : i32
    %c0_i32_0 = arith.constant 0 : i32
    %c0_i32_1 = arith.constant 0 : i32
    return %c0_i32, %c0_i32_0 : i32, i32
  }
  func.func @transform_2(%arg0: i32) -> (i32, i32) {
    %c0_i32 = arith.constant 0 : i32
    %c0_i32_0 = arith.constant 0 : i32
    %c0_i32_1 = arith.constant 0 : i32
    return %c0_i32, %c0_i32_0 : i32, i32
  }
  func.func @transform_3(%arg0: i32) -> (i32, i32) {
    %c0_i32 = arith.constant 0 : i32
    %c0_i32_0 = arith.constant 0 : i32
    %c0_i32_1 = arith.constant 0 : i32
    return %c0_i32, %c0_i32_0 : i32, i32
  }
  func.func @transform_4(%arg0: i32) -> (i32, i32) {
    %c0_i32 = arith.constant 0 : i32
    %c0_i32_0 = arith.constant 0 : i32
    return %arg0, %c0_i32 : i32, i32
  }
}

</mosaic_0001>

<bundles_post_ra>
// kernel: tpu_custom_call.1
= control target key start
LH: loop header
LB: loop body
LE: loop exit
PB: predicated region body
PF: predicated region fallthrough
CT: control target
= control target key end

     0   :  { %9 = vsyncpa [#allocation3], 0  ;;  %s4556_s0 = inlined_call_operand.hbm [shape: f32[8,3072], index: 0, kind: input, shape index: {}]   ;;  %s4557_s1 = inlined_call_operand.hbm [shape: bf16[3072,256], index: 1, kind: input, shape index: {}]   ;;  %s4558_s2 = inlined_call_operand.hbm [shape: bf16[256,128], index: 2, kind: input, shape index: {}]   ;;  %s4559_s3 = inlined_call_operand.hbm [shape: bf16[128,128], index: 3, kind: input, shape index: {}]   ;;  %s4560_s4 = inlined_call_operand.hbm [shape: f32[8,128], index: 4, kind: output, shape index: {}]  }
   0x1   :  { %10 = vsyncpa [#allocation6], 0 }
   0x2   :  { %11 = vsyncpa [#allocation9], 0 }
   0x3   :  { %12 = vsyncpa [#allocation4], 0  ;;  %s4460_s15 = smov [#allocation5]   ;;  %s4342_s19 = scalar_lea.hbm %s4557_s1, 49152 }
   0x4   :  { %s28_s16 = sshll.u32 %s4460_s15, 4  ;;  %p4343_p0 = scmp.ne.s32.totalorder %s4557_s1, %s4342_s19  ;;  %s29_s16 = int_to_ptr.vmem [resolvable:$true] %s28_s16 }
   0x5   :  { %p4346_p1 = scmp.lt.u32.totalorder %s4342_s19, %s4557_s1 }
   0x7   :  { %p4348_p2 = pnand %p4346_p1, %p4343_p0 }
   0x9   :  { %4351 = shalt.err (!%p4348_p2)
}
   0xa   :  { %s4352_s24 = scalar_lea.vmem %s29_s16, 49152  ;;  %p4357_p4 = scmp.lt.s32.totalorder %s29_s16, %s29_s16 }
   0xb   :  { %p4353_p3 = scmp.ne.s32.totalorder %s29_s16, %s4352_s24  ;;  %p4358_p5 = scmp.lt.s32.totalorder %s4352_s24, %s4352_s24 }
   0xd   :  { %p4359_p6 = por %p4358_p5, %p4357_p4 }
   0xf   :  { %p4360_p7 = pnand %p4359_p6, %p4353_p3 }
  0x11   :  { %4363 = shalt.err (!%p4360_p7)
}
  0x12   :  { %s4461_s25 = smov 128   ;;  %s4462_s26 = smov 8  }
  0x13   :  { %34 = dma.hbm_to_vmem [thread:$0]  %s4557_s1, 49152, %s29_s16, [#allocation6], %s4461_s25, %s4461_s25, %s4462_s26  }
  0x14   :  { %s4463_s29 = smov [#allocation2]   ;;  %s4464_s5 = smov [#allocation7]  }
  0x15   :  { %s19_s30 = sshll.u32 %s4463_s29, 4  ;;  %s40_s6 = sshll.u32 %s4464_s5, 4  ;;  %s20_s30 = int_to_ptr.vmem [resolvable:$true] %s19_s30  ;;  %s41_s6 = int_to_ptr.vmem [resolvable:$true] %s40_s6 }
  0x16   :  { %s4364_s9 = scalar_lea.hbm %s4556_s0, 3072 }
  0x17   :  { %p4365_p8 = scmp.ne.s32.totalorder %s4556_s0, %s4364_s9  ;;  %p4368_p9 = scmp.lt.u32.totalorder %s4364_s9, %s4556_s0 }
  0x19   :  { %p4370_p10 = pnand %p4368_p9, %p4365_p8 }
  0x1b   :  { %4373 = shalt.err (!%p4370_p10)
}
  0x1c   :  { %s4374_s1 = scalar_lea.vmem %s20_s30, 3072  ;;  %p4379_p12 = scmp.lt.s32.totalorder %s20_s30, %s20_s30 }
  0x1d   :  { %p4375_p11 = scmp.ne.s32.totalorder %s20_s30, %s4374_s1  ;;  %p4380_p13 = scmp.lt.s32.totalorder %s4374_s1, %s4374_s1 }
  0x1f   :  { %p4381_p0 = por %p4380_p13, %p4379_p12 }
  0x21   :  { %p4382_p1 = pnand %p4381_p0, %p4375_p11 }
  0x23   :  { %4385 = shalt.err (!%p4382_p1)
}
  0x24   :  { %22 = dma.hbm_to_vmem [thread:$0]  %s4556_s0, 3072, %s20_s30, [#allocation3]  }
  0x25   :  { %s4386_s18 = scalar_lea.hbm %s4558_s2, 2048 }
  0x26   :  { %p4387_p2 = scmp.ne.s32.totalorder %s4558_s2, %s4386_s18  ;;  %p4390_p3 = scmp.lt.u32.totalorder %s4386_s18, %s4558_s2 }
  0x28   :  { %p4392_p4 = pnand %p4390_p3, %p4387_p2 }
  0x2a   :  { %4395 = shalt.err (!%p4392_p4)
}
  0x2b   :  { %s4396_s23 = scalar_lea.vmem %s41_s6, 2048  ;;  %p4401_p6 = scmp.lt.s32.totalorder %s41_s6, %s41_s6 }
  0x2c   :  { %p4397_p5 = scmp.ne.s32.totalorder %s41_s6, %s4396_s23  ;;  %p4402_p7 = scmp.lt.s32.totalorder %s4396_s23, %s4396_s23 }
  0x2e   :  { %p4403_p8 = por %p4402_p7, %p4401_p6 }
  0x30   :  { %p4404_p9 = pnand %p4403_p8, %p4397_p5 }
  0x32   :  { %4407 = shalt.err (!%p4404_p9)
}
  0x33   :  { %s4465_s0 = smov 64   ;;  %s4466_s24 = smov 4  }
  0x34   :  { %46 = dma.hbm_to_vmem [thread:$0]  %s4558_s2, 2048, %s41_s6, [#allocation6], %s4465_s0, %s4465_s0, %s4466_s24  }
  0x35   :  { %s4467_s27 = smov [#allocation8]   ;;  %s4408_s5 = scalar_lea.hbm %s4559_s3, 1024 }
  0x36   :  { %s52_s28 = sshll.u32 %s4467_s27, 4  ;;  %p4409_p10 = scmp.ne.s32.totalorder %s4559_s3, %s4408_s5  ;;  %s53_s28 = int_to_ptr.vmem [resolvable:$true] %s52_s28 }
  0x37   :  { %p4412_p11 = scmp.lt.u32.totalorder %s4408_s5, %s4559_s3 }
  0x39   :  { %p4414_p12 = pnand %p4412_p11, %p4409_p10 }
  0x3b   :  { %4417 = shalt.err (!%p4414_p12)
}
  0x3c   :  { %s4418_s11 = scalar_lea.vmem %s53_s28, 1024  ;;  %p4423_p0 = scmp.lt.s32.totalorder %s53_s28, %s53_s28 }
  0x3d   :  { %p4419_p13 = scmp.ne.s32.totalorder %s53_s28, %s4418_s11  ;;  %p4424_p1 = scmp.lt.s32.totalorder %s4418_s11, %s4418_s11 }
  0x3f   :  { %p4425_p2 = por %p4424_p1, %p4423_p0 }
  0x41   :  { %p4426_p3 = pnand %p4425_p2, %p4419_p13 }
  0x43   :  { %4429 = shalt.err (!%p4426_p3)
}
  0x44   :  { %58 = dma.hbm_to_vmem [thread:$0]  %s4559_s3, 1024, %s53_s28, [#allocation9], %s4465_s0, %s4465_s0, %s4466_s24  }
  0x45   :  { %4452 = dma.done.wait [#allocation3], 3072  }
  0x46   :  { %4453 = vsyncadd [#allocation3], 4294964224 }
  0x47   :  { %4454 = dma.done.wait [#allocation6], 51200  }
  0x48   :  { %4455 = vsyncadd [#allocation6], 4294916096 }
  0x49   :  { %4456 = dma.done.wait [#allocation9], 1024  }
  0x4a   :  { %4457 = vsyncadd [#allocation9], 4294966272  ;;  %v3738_v0 = vld [vmem:[#allocation5 + $0x4] ss:$8 sps:$4 sm:$0xff]   ;;  %v3742_v2 = vld [vmem:[#allocation5] ss:$8 sps:$4 sm:$0xff]  }
  0x4b   :  { %v3740_v1 = vld [vmem:[#allocation5 + $0x504] ss:$8 sps:$4 sm:$0xff]   ;;  %2424 = vmatprep.subr.bf16.mxu1 %v3738_v0  ;;  %v3743_v3 = vld [vmem:[#allocation5 + $0x500] ss:$8 sps:$4 sm:$0xff]   ;;  %v3744_v4 = vld [vmem:[#allocation5 + $0x14] ss:$8 sps:$4 sm:$0xff]  }
  0x4c   :  { %2629 = vmatprep.subr.bf16.mxu0 %v3740_v1  ;;  %2425 = vmatpush1.bf16.msra.mxu1 %v3742_v2  ;;  %v3746_v5 = vld [vmem:[#allocation5 + $0x514] ss:$8 sps:$4 sm:$0xff]   ;;  %v3748_v6 = vld [vmem:[#allocation5 + $0x10] ss:$8 sps:$4 sm:$0xff]   ;;  %v3750_v8 = vld [vmem:[#allocation5 + $0x24] ss:$8 sps:$4 sm:$0xff]  }
  0x4d   :  { %2630 = vmatpush1.bf16.msra.mxu0 %v3743_v3  ;;  %2426 = vmatprep.subr.bf16.mxu1 %v3744_v4  ;;  %v3749_v7 = vld [vmem:[#allocation5 + $0x510] ss:$8 sps:$4 sm:$0xff]   ;;  %v3752_v9 = vld [vmem:[#allocation5 + $0x524] ss:$8 sps:$4 sm:$0xff]   ;;  %v3754_v10 = vld [vmem:[#allocation5 + $0x20] ss:$8 sps:$4 sm:$0xff]  }
  0x4e   :  { %2631 = vmatprep.subr.bf16.mxu0 %v3746_v5  ;;  %v3755_v11 = vld [vmem:[#allocation5 + $0x520] ss:$8 sps:$4 sm:$0xff]   ;;  %v3756_v12 = vld [vmem:[#allocation5 + $0x34] ss:$8 sps:$4 sm:$0xff]   ;;  %v3760_v14 = vld [vmem:[#allocation5 + $0x30] ss:$8 sps:$4 sm:$0xff]  }
  0x4f   :  { %v3758_v13 = vld [vmem:[#allocation5 + $0x534] ss:$8 sps:$4 sm:$0xff]   ;;  %v3761_v15 = vld [vmem:[#allocation5 + $0x530] ss:$8 sps:$4 sm:$0xff]   ;;  %v3762_v16 = vld [vmem:[#allocation5 + $0x44] ss:$8 sps:$4 sm:$0xff]  }
  0x50   :  { %2427 = vmatpush1.bf16.msra.mxu1 %v3748_v6  ;;  %v3764_v17 = vld [vmem:[#allocation5 + $0x544] ss:$8 sps:$4 sm:$0xff]   ;;  %v3766_v18 = vld [vmem:[#allocation5 + $0x40] ss:$8 sps:$4 sm:$0xff]   ;;  %v3768_v20 = vld [vmem:[#allocation5 + $0x54] ss:$8 sps:$4 sm:$0xff]  }
  0x51   :  { %2632 = vmatpush1.bf16.msra.mxu0 %v3749_v7  ;;  %2428 = vmatprep.subr.bf16.mxu1 %v3750_v8  ;;  %v3767_v19 = vld [vmem:[#allocation5 + $0x540] ss:$8 sps:$4 sm:$0xff]   ;;  %v3770_v21 = vld [vmem:[#allocation5 + $0x554] ss:$8 sps:$4 sm:$0xff]   ;;  %v3772_v22 = vld [vmem:[#allocation5 + $0x50] ss:$8 sps:$4 sm:$0xff]  }
  0x52   :  { %2633 = vmatprep.subr.bf16.mxu0 %v3752_v9  ;;  %v3773_v23 = vld [vmem:[#allocation5 + $0x550] ss:$8 sps:$4 sm:$0xff]   ;;  %v3774_v24 = vld [vmem:[#allocation5 + $0x64] ss:$8 sps:$4 sm:$0xff]   ;;  %v3778_v26 = vld [vmem:[#allocation5 + $0x60] ss:$8 sps:$4 sm:$0xff]  }
  0x53   :  { %v3776_v25 = vld [vmem:[#allocation5 + $0x564] ss:$8 sps:$4 sm:$0xff]   ;;  %v3779_v27 = vld [vmem:[#allocation5 + $0x560] ss:$8 sps:$4 sm:$0xff]   ;;  %v3780_v28 = vld [vmem:[#allocation5 + $0x74] ss:$8 sps:$4 sm:$0xff]  }
  0x54   :  { %2429 = vmatpush1.bf16.msra.mxu1 %v3754_v10  ;;  %v3782_v29 = vld [vmem:[#allocation5 + $0x574] ss:$8 sps:$4 sm:$0xff]   ;;  %v3784_v30 = vld [vmem:[#allocation5 + $0x70] ss:$8 sps:$4 sm:$0xff]   ;;  %v3786_v32 = vld [vmem:[#allocation5 + $0x84] ss:$8 sps:$4 sm:$0xff]  }
  0x55   :  { %2634 = vmatpush1.bf16.msra.mxu0 %v3755_v11  ;;  %2430 = vmatprep.subr.bf16.mxu1 %v3756_v12  ;;  %v3785_v31 = vld [vmem:[#allocation5 + $0x570] ss:$8 sps:$4 sm:$0xff]   ;;  %v3788_v33 = vld [vmem:[#allocation5 + $0x584] ss:$8 sps:$4 sm:$0xff]   ;;  %v3790_v34 = vld [vmem:[#allocation5 + $0x80] ss:$8 sps:$4 sm:$0xff]  }
  0x56   :  { %2635 = vmatprep.subr.bf16.mxu0 %v3758_v13  ;;  %v3791_v35 = vld [vmem:[#allocation5 + $0x580] ss:$8 sps:$4 sm:$0xff]   ;;  %v3792_v36 = vld [vmem:[#allocation5 + $0x94] ss:$8 sps:$4 sm:$0xff]   ;;  %v3796_v38 = vld [vmem:[#allocation5 + $0x90] ss:$8 sps:$4 sm:$0xff]  }
  0x57   :  { %v3794_v37 = vld [vmem:[#allocation5 + $0x594] ss:$8 sps:$4 sm:$0xff]   ;;  %v3797_v39 = vld [vmem:[#allocation5 + $0x590] ss:$8 sps:$4 sm:$0xff]   ;;  %v3798_v40 = vld [vmem:[#allocation5 + $0xa4] ss:$8 sps:$4 sm:$0xff]  }
  0x58   :  { %2431 = vmatpush1.bf16.msra.mxu1 %v3760_v14  ;;  %v3800_v41 = vld [vmem:[#allocation5 + $0x5a4] ss:$8 sps:$4 sm:$0xff]   ;;  %v3802_v42 = vld [vmem:[#allocation5 + $0xa0] ss:$8 sps:$4 sm:$0xff]   ;;  %v3804_v44 = vld [vmem:[#allocation5 + $0xb4] ss:$8 sps:$4 sm:$0xff]  }
  0x59   :  { %2636 = vmatpush1.bf16.msra.mxu0 %v3761_v15  ;;  %2432 = vmatprep.subr.bf16.mxu1 %v3762_v16  ;;  %v3803_v43 = vld [vmem:[#allocation5 + $0x5a0] ss:$8 sps:$4 sm:$0xff]   ;;  %v3806_v45 = vld [vmem:[#allocation5 + $0x5b4] ss:$8 sps:$4 sm:$0xff]   ;;  %v3808_v47 = vld [vmem:[#allocation5 + $0xb0] ss:$8 sps:$4 sm:$0xff]  }
  0x5a   :  { %2637 = vmatprep.subr.bf16.mxu0 %v3764_v17  ;;  %v73_v46 = vld [vmem:[#allocation2 + $0x8] sm:$0xff]  ;;  %v3809_v49 = vld [vmem:[#allocation5 + $0x5b0] ss:$8 sps:$4 sm:$0xff]   ;;  %v3816_v56 = vld [vmem:[#allocation5 + $0xd4] ss:$8 sps:$4 sm:$0xff]   ;;  %vm4469_vm0 = vmmov 0  }
  0x5b   :  { %v97_v48 = vpack.c.bf16 %v73_v46, %v73_v46  ;;  %v83_v50 = vld [vmem:[#allocation2 + $0x58] sm:$0xff]  ;;  %v3810_v51 = vld [vmem:[#allocation5 + $0xc4] ss:$8 sps:$4 sm:$0xff]   ;;  %v3814_v54 = vld [vmem:[#allocation5 + $0xc0] ss:$8 sps:$4 sm:$0xff]   ;;  %s4470_s3 = smov [#allocation10]  }
  0x5c   :  { %2433 = vmatpush1.bf16.msra.mxu1 %v3766_v18  ;;  %v3812_v52 = vld [vmem:[#allocation5 + $0x5c4] ss:$8 sps:$4 sm:$0xff]   ;;  %v107_v53 = vpack.c.bf16 %v83_v50, %v83_v50  ;;  %v3815_v55 = vld [vmem:[#allocation5 + $0x5c0] ss:$8 sps:$4 sm:$0xff]   ;;  %v3818_v57 = vld [vmem:[#allocation5 + $0x5d4] ss:$8 sps:$4 sm:$0xff]  }
  0x5d   :  { %2638 = vmatpush1.bf16.msra.mxu0 %v3767_v19  ;;  %2434 = vmatprep.subr.bf16.mxu1 %v3768_v20  ;;  %v3820_v58 = vld [vmem:[#allocation5 + $0xd0] ss:$8 sps:$4 sm:$0xff]   ;;  %v3822_v60 = vld [vmem:[#allocation5 + $0xe4] ss:$8 sps:$4 sm:$0xff]   ;;  %v3826_v62 = vld [vmem:[#allocation5 + $0xe0] ss:$8 sps:$4 sm:$0xff]  }
  0x5e   :  { %2639 = vmatprep.subr.bf16.mxu0 %v3770_v21  ;;  %2456 = vmatprep.mubr.bf16.mxu1 %v97_v48  ;;  %v3821_v59 = vld [vmem:[#allocation5 + $0x5d0] ss:$8 sps:$4 sm:$0xff]   ;;  %v3824_v61 = vld [vmem:[#allocation5 + $0x5e4] ss:$8 sps:$4 sm:$0xff]   ;;  %v3827_v63 = vld [vmem:[#allocation5 + $0x5e0] ss:$8 sps:$4 sm:$0xff]  }
  0x5f   :  { %2661 = vmatprep.mubr.bf16.mxu0 %v107_v53  ;;  %v3828_v0 = vld [vmem:[#allocation5 + $0xf4] ss:$8 sps:$4 sm:$0xff]   ;;  %v3832_v2 = vld [vmem:[#allocation5 + $0xf0] ss:$8 sps:$4 sm:$0xff]   ;;  %v3836_v4 = vld [vmem:[#allocation5 + $0x104] ss:$8 sps:$4 sm:$0xff]  }
  0x60   :  { %2435 = vmatpush1.bf16.msra.mxu1 %v3772_v22  ;;  %v3830_v1 = vld [vmem:[#allocation5 + $0x5f4] ss:$8 sps:$4 sm:$0xff]   ;;  %v3833_v3 = vld [vmem:[#allocation5 + $0x5f0] ss:$8 sps:$4 sm:$0xff]   ;;  %v72_v5 = vld [vmem:[#allocation2] sm:$0xff]  ;;  %s3215_s12 = sshll.u32 %s4470_s3, 4  ;;  %s3216_s12 = int_to_ptr.vmem [resolvable:$true] %s3215_s12 }
  0x61   :  { %2640 = vmatpush1.bf16.msra.mxu0 %v3773_v23  ;;  %2436 = vmatprep.subr.bf16.mxu1 %v3774_v24  ;;  %v82_v6 = vld [vmem:[#allocation2 + $0x50] sm:$0xff]  ;;  %v3839_v7 = vld [vmem:[#allocation5 + $0x604] ss:$8 sps:$4 sm:$0xff]   ;;  %v3834_v8 = vld [vmem:[#allocation5 + $0x100] ss:$8 sps:$4 sm:$0xff]   ;;  %v96_v10 = vpack.c.bf16 %v72_v5, %v72_v5  ;;  %s4430_s13 = scalar_lea.vmem %s3216_s12, 128  ;;  %p4435_p5 = scmp.lt.s32.totalorder %s3216_s12, %s3216_s12 }
  0x62   :  { %2641 = vmatprep.subr.bf16.mxu0 %v3776_v25  ;;  %v3837_v9 = vld [vmem:[#allocation5 + $0x600] ss:$8 sps:$4 sm:$0xff]   ;;  %v106_v11 = vpack.c.bf16 %v82_v6, %v82_v6  ;;  %v3842_v12 = vld [vmem:[#allocation5 + $0x114] ss:$8 sps:$4 sm:$0xff]   ;;  %v3840_v14 = vld [vmem:[#allocation5 + $0x110] ss:$8 sps:$4 sm:$0xff]   ;;  %p4431_p4 = scmp.ne.s32.totalorder %s3216_s12, %s4430_s13  ;;  %p4436_p6 = scmp.lt.s32.totalorder %s4430_s13, %s4430_s13 }
  0x63   :  { %v3845_v13 = vld [vmem:[#allocation5 + $0x614] ss:$8 sps:$4 sm:$0xff]   ;;  %v3843_v15 = vld [vmem:[#allocation5 + $0x610] ss:$8 sps:$4 sm:$0xff]   ;;  %v3848_v16 = vld [vmem:[#allocation5 + $0x124] ss:$8 sps:$4 sm:$0xff]  }
  0x64   :  { %2437 = vmatpush1.bf16.msra.mxu1 %v3778_v26  ;;  %v3851_v17 = vld [vmem:[#allocation5 + $0x624] ss:$8 sps:$4 sm:$0xff]   ;;  %v3846_v18 = vld [vmem:[#allocation5 + $0x120] ss:$8 sps:$4 sm:$0xff]   ;;  %v3854_v20 = vld [vmem:[#allocation5 + $0x134] ss:$8 sps:$4 sm:$0xff]   ;;  %p4437_p7 = por %p4436_p6, %p4435_p5 }
  0x65   :  { %2642 = vmatpush1.bf16.msra.mxu0 %v3779_v27  ;;  %2438 = vmatprep.subr.bf16.mxu1 %v3780_v28  ;;  %v3849_v19 = vld [vmem:[#allocation5 + $0x620] ss:$8 sps:$4 sm:$0xff]   ;;  %v3857_v21 = vld [vmem:[#allocation5 + $0x634] ss:$8 sps:$4 sm:$0xff]   ;;  %v3852_v22 = vld [vmem:[#allocation5 + $0x130] ss:$8 sps:$4 sm:$0xff]  }
  0x66   :  { %2643 = vmatprep.subr.bf16.mxu0 %v3782_v29  ;;  %v3855_v23 = vld [vmem:[#allocation5 + $0x630] ss:$8 sps:$4 sm:$0xff]   ;;  %v3860_v24 = vld [vmem:[#allocation5 + $0x144] ss:$8 sps:$4 sm:$0xff]   ;;  %v3858_v26 = vld [vmem:[#allocation5 + $0x140] ss:$8 sps:$4 sm:$0xff]   ;;  %p4438_p8 = pnand %p4437_p7, %p4431_p4 }
  0x67   :  { %v3863_v25 = vld [vmem:[#allocation5 + $0x644] ss:$8 sps:$4 sm:$0xff]   ;;  %v3861_v27 = vld [vmem:[#allocation5 + $0x640] ss:$8 sps:$4 sm:$0xff]   ;;  %v3866_v28 = vld [vmem:[#allocation5 + $0x154] ss:$8 sps:$4 sm:$0xff]  }
  0x68   :  { %2439 = vmatpush1.bf16.msra.mxu1 %v3784_v30  ;;  %v3869_v29 = vld [vmem:[#allocation5 + $0x654] ss:$8 sps:$4 sm:$0xff]   ;;  %v3864_v30 = vld [vmem:[#allocation5 + $0x150] ss:$8 sps:$4 sm:$0xff]   ;;  %v3882_v46 = vld [vmem:[#allocation5 + $0x180] ss:$8 sps:$4 sm:$0xff]  }
  0x69   :  { %2644 = vmatpush1.bf16.msra.mxu0 %v3785_v31  ;;  %2440 = vmatprep.subr.bf16.mxu1 %v3786_v32  ;;  %v3867_v31 = vld [vmem:[#allocation5 + $0x650] ss:$8 sps:$4 sm:$0xff]   ;;  %v3872_v32 = vld [vmem:[#allocation5 + $0x164] ss:$8 sps:$4 sm:$0xff]   ;;  %v3890_v48 = vld [vmem:[#allocation5 + $0x194] ss:$8 sps:$4 sm:$0xff]  }
  0x6a   :  { %2645 = vmatprep.subr.bf16.mxu0 %v3788_v33  ;;  %v3875_v33 = vld [vmem:[#allocation5 + $0x664] ss:$8 sps:$4 sm:$0xff]   ;;  %v3888_v50 = vld [vmem:[#allocation5 + $0x190] ss:$8 sps:$4 sm:$0xff]   ;;  %v3918_v6 = vld [vmem:[#allocation5 + $0x1e0] ss:$8 sps:$4 sm:$0xff]  }
  0x6b   :  { %v3899_v53 = vld [vmem:[#allocation5 + $0x6a4] ss:$8 sps:$4 sm:$0xff]  }
  0x6c   :  { %2441 = vmatpush1.bf16.msra.mxu1 %v3790_v34  ;;  %v75_v34 = vld [vmem:[#allocation2 + $0x18] sm:$0xff]  ;;  %v3923_v5 = vld [vmem:[#allocation5 + $0x6e4] ss:$8 sps:$4 sm:$0xff]  }
  0x6d   :  { %2646 = vmatpush1.bf16.msra.mxu0 %v3791_v35  ;;  %2442 = vmatprep.subr.bf16.mxu1 %v3792_v36  ;;  %v3870_v35 = vld [vmem:[#allocation5 + $0x160] ss:$8 sps:$4 sm:$0xff]   ;;  %v99_v36 = vpack.c.bf16 %v75_v34, %v75_v34  ;;  %v3948_v34 = vld [vmem:[#allocation5 + $0x230] ss:$8 sps:$4 sm:$0xff]  }
  0x6e   :  { %2647 = vmatprep.subr.bf16.mxu0 %v3794_v37  ;;  %v3873_v37 = vld [vmem:[#allocation5 + $0x660] ss:$8 sps:$4 sm:$0xff]  }
  0x70   :  { %2443 = vmatpush1.bf16.msra.mxu1 %v3796_v38  ;;  %v85_v38 = vld [vmem:[#allocation2 + $0x68] sm:$0xff] }
  0x71   :  { %2648 = vmatpush1.bf16.msra.mxu0 %v3797_v39  ;;  %2444 = vmatprep.subr.bf16.mxu1 %v3798_v40  ;;  %v3878_v39 = vld [vmem:[#allocation5 + $0x174] ss:$8 sps:$4 sm:$0xff]  }
  0x72   :  { %2649 = vmatprep.subr.bf16.mxu0 %v3800_v41  ;;  %v3881_v40 = vld [vmem:[#allocation5 + $0x674] ss:$8 sps:$4 sm:$0xff]   ;;  %v109_v41 = vpack.c.bf16 %v85_v38, %v85_v38  ;;  %v3954_v38 = vld [vmem:[#allocation5 + $0x240] ss:$8 sps:$4 sm:$0xff]  }
  0x74   :  { %2445 = vmatpush1.bf16.msra.mxu1 %v3802_v42  ;;  %v3876_v42 = vld [vmem:[#allocation5 + $0x170] ss:$8 sps:$4 sm:$0xff]  }
  0x75   :  { %2650 = vmatpush1.bf16.msra.mxu0 %v3803_v43  ;;  %2446 = vmatprep.subr.bf16.mxu1 %v3804_v44  ;;  %v3879_v43 = vld [vmem:[#allocation5 + $0x670] ss:$8 sps:$4 sm:$0xff]   ;;  %v3884_v44 = vld [vmem:[#allocation5 + $0x184] ss:$8 sps:$4 sm:$0xff]  }
  0x76   :  { %2651 = vmatprep.subr.bf16.mxu0 %v3806_v45  ;;  %v3887_v45 = vld [vmem:[#allocation5 + $0x684] ss:$8 sps:$4 sm:$0xff]  }
  0x78   :  { %2447 = vmatpush1.bf16.msra.mxu1 %v3808_v47  ;;  %v3885_v47 = vld [vmem:[#allocation5 + $0x680] ss:$8 sps:$4 sm:$0xff]  }
  0x79   :  { %2652 = vmatpush1.bf16.msra.mxu0 %v3809_v49  ;;  %2448 = vmatprep.subr.bf16.mxu1 %v3810_v51  ;;  %v3893_v49 = vld [vmem:[#allocation5 + $0x694] ss:$8 sps:$4 sm:$0xff]   ;;  %v3891_v51 = vld [vmem:[#allocation5 + $0x690] ss:$8 sps:$4 sm:$0xff]  }
  0x7a   :  { %2653 = vmatprep.subr.bf16.mxu0 %v3812_v52  ;;  %v3896_v52 = vld [vmem:[#allocation5 + $0x1a4] ss:$8 sps:$4 sm:$0xff]  }
  0x7c   :  { %2449 = vmatpush1.bf16.msra.mxu1 %v3814_v54  ;;  %v3894_v54 = vld [vmem:[#allocation5 + $0x1a0] ss:$8 sps:$4 sm:$0xff]  }
  0x7d   :  { %2654 = vmatpush1.bf16.msra.mxu0 %v3815_v55  ;;  %2450 = vmatprep.subr.bf16.mxu1 %v3816_v56  ;;  %v3897_v55 = vld [vmem:[#allocation5 + $0x6a0] ss:$8 sps:$4 sm:$0xff]   ;;  %v3902_v56 = vld [vmem:[#allocation5 + $0x1b4] ss:$8 sps:$4 sm:$0xff]  }
  0x7e   :  { %2655 = vmatprep.subr.bf16.mxu0 %v3818_v57  ;;  %v3905_v57 = vld [vmem:[#allocation5 + $0x6b4] ss:$8 sps:$4 sm:$0xff]  }
  0x80   :  { %2451 = vmatpush1.bf16.msra.mxu1 %v3820_v58  ;;  %v3900_v58 = vld [vmem:[#allocation5 + $0x1b0] ss:$8 sps:$4 sm:$0xff]  }
  0x81   :  { %2656 = vmatpush1.bf16.msra.mxu0 %v3821_v59  ;;  %2452 = vmatprep.subr.bf16.mxu1 %v3822_v60  ;;  %v3903_v59 = vld [vmem:[#allocation5 + $0x6b0] ss:$8 sps:$4 sm:$0xff]   ;;  %v3908_v60 = vld [vmem:[#allocation5 + $0x1c4] ss:$8 sps:$4 sm:$0xff]  }
  0x82   :  { %2657 = vmatprep.subr.bf16.mxu0 %v3824_v61  ;;  %v3911_v61 = vld [vmem:[#allocation5 + $0x6c4] ss:$8 sps:$4 sm:$0xff]  }
  0x84   :  { %2453 = vmatpush1.bf16.msra.mxu1 %v3826_v62  ;;  %v3906_v62 = vld [vmem:[#allocation5 + $0x1c0] ss:$8 sps:$4 sm:$0xff]  }
  0x85   :  { %2658 = vmatpush1.bf16.msra.mxu0 %v3827_v63  ;;  %2454 = vmatprep.subr.bf16.mxu1 %v3828_v0  ;;  %v3909_v63 = vld [vmem:[#allocation5 + $0x6c0] ss:$8 sps:$4 sm:$0xff]   ;;  %v3914_v0 = vld [vmem:[#allocation5 + $0x1d4] ss:$8 sps:$4 sm:$0xff]  }
  0x86   :  { %2659 = vmatprep.subr.bf16.mxu0 %v3830_v1  ;;  %v3917_v1 = vld [vmem:[#allocation5 + $0x6d4] ss:$8 sps:$4 sm:$0xff]  }
  0x88   :  { %2455 = vmatpush1.bf16.msra.mxu1 %v3832_v2  ;;  %v3912_v2 = vld [vmem:[#allocation5 + $0x1d0] ss:$8 sps:$4 sm:$0xff]  }
  0x89   :  { %2660 = vmatpush1.bf16.msra.mxu0 %v3833_v3  ;;  %2465 = vmatprep.subr.bf16.mxu1 %v3836_v4  ;;  %v3915_v3 = vld [vmem:[#allocation5 + $0x6d0] ss:$8 sps:$4 sm:$0xff]   ;;  %v3920_v4 = vld [vmem:[#allocation5 + $0x1e4] ss:$8 sps:$4 sm:$0xff]  }
  0x8a   :  { %2670 = vmatprep.subr.bf16.mxu0 %v3839_v7  ;;  %v3921_v7 = vld [vmem:[#allocation5 + $0x6e0] ss:$8 sps:$4 sm:$0xff]  }
  0x8b   :  { %2457 = vmatmul.mubr.bf16.vlgmr.msra.gmra.mrb[0].mxu1 %v96_v10  ;;  %v3924_v10 = vld [vmem:[#allocation5 + $0x1f0] ss:$8 sps:$4 sm:$0xff]  }
  0x8c   :  { %2662 = vmatmul.mubr.bf16.vlgmr.msra.gmra.mrb[0].mxu0 %v106_v11  ;;  %2466 = vmatpush1.bf16.msra.mxu1 %v3834_v8  ;;  %v3926_v8 = vld [vmem:[#allocation5 + $0x1f4] ss:$8 sps:$4 sm:$0xff]   ;;  %v3927_v11 = vld [vmem:[#allocation5 + $0x6f0] ss:$8 sps:$4 sm:$0xff]  }
  0x8d   :  { %2671 = vmatpush1.bf16.msra.mxu0 %v3837_v9  ;;  %2467 = vmatprep.subr.bf16.mxu1 %v3842_v12  ;;  %v3929_v9 = vld [vmem:[#allocation5 + $0x6f4] ss:$8 sps:$4 sm:$0xff]   ;;  %v3932_v12 = vld [vmem:[#allocation5 + $0x204] ss:$8 sps:$4 sm:$0xff]  }
  0x8e   :  { %2672 = vmatprep.subr.bf16.mxu0 %v3845_v13  ;;  %2497 = vmatprep.mubr.bf16.mxu1 %v99_v36  ;;  %v74_v13 = vld [vmem:[#allocation2 + $0x10] sm:$0xff]  ;;  %v3956_v36 = vld [vmem:[#allocation5 + $0x244] ss:$8 sps:$4 sm:$0xff]  }
  0x8f   :  { %2702 = vmatprep.mubr.bf16.mxu0 %v109_v41  ;;  %v3965_v41 = vld [vmem:[#allocation5 + $0x754] ss:$8 sps:$4 sm:$0xff]  }
  0x90   :  { %2468 = vmatpush1.bf16.msra.mxu1 %v3840_v14  ;;  %v84_v14 = vld [vmem:[#allocation2 + $0x60] sm:$0xff] }
  0x91   :  { %2673 = vmatpush1.bf16.msra.mxu0 %v3843_v15  ;;  %2469 = vmatprep.subr.bf16.mxu1 %v3848_v16  ;;  %v3935_v15 = vld [vmem:[#allocation5 + $0x704] ss:$8 sps:$4 sm:$0xff]   ;;  %v3930_v16 = vld [vmem:[#allocation5 + $0x200] ss:$8 sps:$4 sm:$0xff]  }
  0x92   :  { %2674 = vmatprep.subr.bf16.mxu0 %v3851_v17  ;;  %v3933_v17 = vld [vmem:[#allocation5 + $0x700] ss:$8 sps:$4 sm:$0xff]  }
  0x94   :  { %2470 = vmatpush1.bf16.msra.mxu1 %v3846_v18  ;;  %v98_v18 = vpack.c.bf16 %v74_v13, %v74_v13  ;;  %v4019_v13 = vld [vmem:[#allocation5 + $0x7e4] ss:$8 sps:$4 sm:$0xff]  }
  0x95   :  { %2675 = vmatpush1.bf16.msra.mxu0 %v3849_v19  ;;  %2471 = vmatprep.subr.bf16.mxu1 %v3854_v20  ;;  %v108_v19 = vpack.c.bf16 %v84_v14, %v84_v14  ;;  %v3938_v20 = vld [vmem:[#allocation5 + $0x214] ss:$8 sps:$4 sm:$0xff]   ;;  %v4014_v14 = vld [vmem:[#allocation5 + $0x2e0] ss:$8 sps:$4 sm:$0xff]  }
  0x96   :  { %2676 = vmatprep.subr.bf16.mxu0 %v3857_v21  ;;  %v3941_v21 = vld [vmem:[#allocation5 + $0x714] ss:$8 sps:$4 sm:$0xff]  }
  0x98   :  { %2472 = vmatpush1.bf16.msra.mxu1 %v3852_v22  ;;  %v77_v22 = vld [vmem:[#allocation2 + $0x28] sm:$0xff] }
  0x99   :  { %2677 = vmatpush1.bf16.msra.mxu0 %v3855_v23  ;;  %2473 = vmatprep.subr.bf16.mxu1 %v3860_v24  ;;  %v3936_v23 = vld [vmem:[#allocation5 + $0x210] ss:$8 sps:$4 sm:$0xff]   ;;  %v101_v24 = vpack.c.bf16 %v77_v22, %v77_v22 }
  0x9a   :  { %2678 = vmatprep.subr.bf16.mxu0 %v3863_v25  ;;  %v3939_v25 = vld [vmem:[#allocation5 + $0x710] ss:$8 sps:$4 sm:$0xff]  }
  0x9b   :  { %v86_v22 = vld [vmem:[#allocation2 + $0x70] sm:$0xff] }
  0x9c   :  { %2474 = vmatpush1.bf16.msra.mxu1 %v3858_v26  ;;  %v87_v26 = vld [vmem:[#allocation2 + $0x78] sm:$0xff] }
  0x9d   :  { %2679 = vmatpush1.bf16.msra.mxu0 %v3861_v27  ;;  %2475 = vmatprep.subr.bf16.mxu1 %v3866_v28  ;;  %v3944_v27 = vld [vmem:[#allocation5 + $0x224] ss:$8 sps:$4 sm:$0xff]  }
  0x9e   :  { %2680 = vmatprep.subr.bf16.mxu0 %v3869_v29  ;;  %v3947_v28 = vld [vmem:[#allocation5 + $0x724] ss:$8 sps:$4 sm:$0xff]   ;;  %v111_v29 = vpack.c.bf16 %v87_v26, %v87_v26 }
  0xa0   :  { %2476 = vmatpush1.bf16.msra.mxu1 %v3864_v30  ;;  %v3942_v30 = vld [vmem:[#allocation5 + $0x220] ss:$8 sps:$4 sm:$0xff]  }
  0xa1   :  { %2681 = vmatpush1.bf16.msra.mxu0 %v3867_v31  ;;  %2477 = vmatprep.subr.bf16.mxu1 %v3872_v32  ;;  %v3945_v31 = vld [vmem:[#allocation5 + $0x720] ss:$8 sps:$4 sm:$0xff]   ;;  %v3950_v32 = vld [vmem:[#allocation5 + $0x234] ss:$8 sps:$4 sm:$0xff]  }
  0xa2   :  { %2682 = vmatprep.subr.bf16.mxu0 %v3875_v33  ;;  %v3953_v33 = vld [vmem:[#allocation5 + $0x734] ss:$8 sps:$4 sm:$0xff]  }
  0xa4   :  { %2478 = vmatpush1.bf16.msra.mxu1 %v3870_v35  ;;  %v3951_v35 = vld [vmem:[#allocation5 + $0x730] ss:$8 sps:$4 sm:$0xff]  }
  0xa5   :  { %2683 = vmatpush1.bf16.msra.mxu0 %v3873_v37  ;;  %2479 = vmatprep.subr.bf16.mxu1 %v3878_v39  ;;  %v3959_v37 = vld [vmem:[#allocation5 + $0x744] ss:$8 sps:$4 sm:$0xff]   ;;  %v3957_v39 = vld [vmem:[#allocation5 + $0x740] ss:$8 sps:$4 sm:$0xff]  }
  0xa6   :  { %2684 = vmatprep.subr.bf16.mxu0 %v3881_v40  ;;  %v3962_v40 = vld [vmem:[#allocation5 + $0x254] ss:$8 sps:$4 sm:$0xff]  }
  0xa8   :  { %2480 = vmatpush1.bf16.msra.mxu1 %v3876_v42  ;;  %v3960_v42 = vld [vmem:[#allocation5 + $0x250] ss:$8 sps:$4 sm:$0xff]  }
  0xa9   :  { %2685 = vmatpush1.bf16.msra.mxu0 %v3879_v43  ;;  %2481 = vmatprep.subr.bf16.mxu1 %v3884_v44  ;;  %v3963_v43 = vld [vmem:[#allocation5 + $0x750] ss:$8 sps:$4 sm:$0xff]   ;;  %v3968_v44 = vld [vmem:[#allocation5 + $0x264] ss:$8 sps:$4 sm:$0xff]  }
  0xaa   :  { %2686 = vmatprep.subr.bf16.mxu0 %v3887_v45  ;;  %v3971_v45 = vld [vmem:[#allocation5 + $0x764] ss:$8 sps:$4 sm:$0xff]  }
  0xac   :  { %2482 = vmatpush1.bf16.msra.mxu1 %v3882_v46  ;;  %v3966_v46 = vld [vmem:[#allocation5 + $0x260] ss:$8 sps:$4 sm:$0xff]  }
  0xad   :  { %2687 = vmatpush1.bf16.msra.mxu0 %v3885_v47  ;;  %2483 = vmatprep.subr.bf16.mxu1 %v3890_v48  ;;  %v3969_v47 = vld [vmem:[#allocation5 + $0x760] ss:$8 sps:$4 sm:$0xff]   ;;  %v3974_v48 = vld [vmem:[#allocation5 + $0x274] ss:$8 sps:$4 sm:$0xff]  }
  0xae   :  { %2688 = vmatprep.subr.bf16.mxu0 %v3893_v49  ;;  %v3977_v49 = vld [vmem:[#allocation5 + $0x774] ss:$8 sps:$4 sm:$0xff]  }
  0xb0   :  { %2484 = vmatpush1.bf16.msra.mxu1 %v3888_v50  ;;  %v3972_v50 = vld [vmem:[#allocation5 + $0x270] ss:$8 sps:$4 sm:$0xff]  }
  0xb1   :  { %2689 = vmatpush1.bf16.msra.mxu0 %v3891_v51  ;;  %2485 = vmatprep.subr.bf16.mxu1 %v3896_v52  ;;  %v3975_v51 = vld [vmem:[#allocation5 + $0x770] ss:$8 sps:$4 sm:$0xff]   ;;  %v3980_v52 = vld [vmem:[#allocation5 + $0x284] ss:$8 sps:$4 sm:$0xff]  }
  0xb2   :  { %2690 = vmatprep.subr.bf16.mxu0 %v3899_v53  ;;  %v3983_v53 = vld [vmem:[#allocation5 + $0x784] ss:$8 sps:$4 sm:$0xff]  }
  0xb4   :  { %2486 = vmatpush1.bf16.msra.mxu1 %v3894_v54  ;;  %v3978_v54 = vld [vmem:[#allocation5 + $0x280] ss:$8 sps:$4 sm:$0xff]  }
  0xb5   :  { %2691 = vmatpush1.bf16.msra.mxu0 %v3897_v55  ;;  %2487 = vmatprep.subr.bf16.mxu1 %v3902_v56  ;;  %v3981_v55 = vld [vmem:[#allocation5 + $0x780] ss:$8 sps:$4 sm:$0xff]   ;;  %v3986_v56 = vld [vmem:[#allocation5 + $0x294] ss:$8 sps:$4 sm:$0xff]  }
  0xb6   :  { %2692 = vmatprep.subr.bf16.mxu0 %v3905_v57  ;;  %v3989_v57 = vld [vmem:[#allocation5 + $0x794] ss:$8 sps:$4 sm:$0xff]  }
  0xb8   :  { %2488 = vmatpush1.bf16.msra.mxu1 %v3900_v58  ;;  %v3984_v58 = vld [vmem:[#allocation5 + $0x290] ss:$8 sps:$4 sm:$0xff]  }
  0xb9   :  { %2693 = vmatpush1.bf16.msra.mxu0 %v3903_v59  ;;  %2489 = vmatprep.subr.bf16.mxu1 %v3908_v60  ;;  %v3987_v59 = vld [vmem:[#allocation5 + $0x790] ss:$8 sps:$4 sm:$0xff]   ;;  %v3992_v60 = vld [vmem:[#allocation5 + $0x2a4] ss:$8 sps:$4 sm:$0xff]  }
  0xba   :  { %2694 = vmatprep.subr.bf16.mxu0 %v3911_v61  ;;  %v3995_v61 = vld [vmem:[#allocation5 + $0x7a4] ss:$8 sps:$4 sm:$0xff]  }
  0xbc   :  { %2490 = vmatpush1.bf16.msra.mxu1 %v3906_v62  ;;  %v3990_v62 = vld [vmem:[#allocation5 + $0x2a0] ss:$8 sps:$4 sm:$0xff]  }
  0xbd   :  { %2695 = vmatpush1.bf16.msra.mxu0 %v3909_v63  ;;  %2491 = vmatprep.subr.bf16.mxu1 %v3914_v0  ;;  %v3993_v63 = vld [vmem:[#allocation5 + $0x7a0] ss:$8 sps:$4 sm:$0xff]   ;;  %v3998_v0 = vld [vmem:[#allocation5 + $0x2b4] ss:$8 sps:$4 sm:$0xff]  }
  0xbe   :  { %2696 = vmatprep.subr.bf16.mxu0 %v3917_v1  ;;  %v4001_v1 = vld [vmem:[#allocation5 + $0x7b4] ss:$8 sps:$4 sm:$0xff]  }
  0xc0   :  { %2492 = vmatpush1.bf16.msra.mxu1 %v3912_v2  ;;  %v3996_v2 = vld [vmem:[#allocation5 + $0x2b0] ss:$8 sps:$4 sm:$0xff]  }
  0xc1   :  { %2697 = vmatpush1.bf16.msra.mxu0 %v3915_v3  ;;  %2493 = vmatprep.subr.bf16.mxu1 %v3920_v4  ;;  %v3999_v3 = vld [vmem:[#allocation5 + $0x7b0] ss:$8 sps:$4 sm:$0xff]   ;;  %v4004_v4 = vld [vmem:[#allocation5 + $0x2c4] ss:$8 sps:$4 sm:$0xff]  }
  0xc2   :  { %2698 = vmatprep.subr.bf16.mxu0 %v3923_v5  ;;  %v4007_v5 = vld [vmem:[#allocation5 + $0x7c4] ss:$8 sps:$4 sm:$0xff]  }
  0xc4   :  { %2494 = vmatpush1.bf16.msra.mxu1 %v3918_v6  ;;  %v4002_v6 = vld [vmem:[#allocation5 + $0x2c0] ss:$8 sps:$4 sm:$0xff]  }
  0xc5   :  { %2699 = vmatpush1.bf16.msra.mxu0 %v3921_v7  ;;  %2495 = vmatprep.subr.bf16.mxu1 %v3926_v8  ;;  %v4005_v7 = vld [vmem:[#allocation5 + $0x7c0] ss:$8 sps:$4 sm:$0xff]   ;;  %v4010_v8 = vld [vmem:[#allocation5 + $0x2d4] ss:$8 sps:$4 sm:$0xff]  }
  0xc6   :  { %2700 = vmatprep.subr.bf16.mxu0 %v3929_v9  ;;  %v4013_v9 = vld [vmem:[#allocation5 + $0x7d4] ss:$8 sps:$4 sm:$0xff]  }
  0xc8   :  { %2496 = vmatpush1.bf16.msra.mxu1 %v3924_v10  ;;  %v4008_v10 = vld [vmem:[#allocation5 + $0x2d0] ss:$8 sps:$4 sm:$0xff]  }
  0xc9   :  { %2701 = vmatpush1.bf16.msra.mxu0 %v3927_v11  ;;  %2506 = vmatprep.subr.bf16.mxu1 %v3932_v12  ;;  %v4011_v11 = vld [vmem:[#allocation5 + $0x7d0] ss:$8 sps:$4 sm:$0xff]   ;;  %v4016_v12 = vld [vmem:[#allocation5 + $0x2e4] ss:$8 sps:$4 sm:$0xff]  }
  0xca   :  { %2711 = vmatprep.subr.bf16.mxu0 %v3935_v15  ;;  %v4017_v15 = vld [vmem:[#allocation5 + $0x7e0] ss:$8 sps:$4 sm:$0xff]  }
  0xcb   :  { %2498 = vmatmul.mubr.bf16.vlgmr.msra.gmra.mrb[0].mxu1 %v98_v18  ;;  %v4020_v18 = vld [vmem:[#allocation5 + $0x2f0] ss:$8 sps:$4 sm:$0xff]  }
  0xcc   :  { %2703 = vmatmul.mubr.bf16.vlgmr.msra.gmra.mrb[0].mxu0 %v108_v19  ;;  %2507 = vmatpush1.bf16.msra.mxu1 %v3930_v16  ;;  %v4022_v16 = vld [vmem:[#allocation5 + $0x2f4] ss:$8 sps:$4 sm:$0xff]   ;;  %v4023_v19 = vld [vmem:[#allocation5 + $0x7f0] ss:$8 sps:$4 sm:$0xff]  }
  0xcd   :  { %2712 = vmatpush1.bf16.msra.mxu0 %v3933_v17  ;;  %2508 = vmatprep.subr.bf16.mxu1 %v3938_v20  ;;  %v4025_v17 = vld [vmem:[#allocation5 + $0x7f4] ss:$8 sps:$4 sm:$0xff]   ;;  %v4028_v20 = vld [vmem:[#allocation5 + $0x304] ss:$8 sps:$4 sm:$0xff]  }
  0xce   :  { %2713 = vmatprep.subr.bf16.mxu0 %v3941_v21  ;;  %2538 = vmatprep.mubr.bf16.mxu1 %v101_v24  ;;  %v76_v21 = vld [vmem:[#allocation2 + $0x20] sm:$0xff] }
  0xcf   :  { %2743 = vmatprep.mubr.bf16.mxu0 %v111_v29  ;;  %v4026_v24 = vld [vmem:[#allocation5 + $0x300] ss:$8 sps:$4 sm:$0xff]   ;;  %v100_v26 = vpack.c.bf16 %v76_v21, %v76_v21  ;;  %v4115_v21 = vld [vmem:[#allocation5 + $0x8e4] ss:$8 sps:$4 sm:$0xff]  }
  0xd0   :  { %2509 = vmatpush1.bf16.msra.mxu1 %v3936_v23  ;;  %v4031_v23 = vld [vmem:[#allocation5 + $0x804] ss:$8 sps:$4 sm:$0xff]  }
  0xd1   :  { %2714 = vmatpush1.bf16.msra.mxu0 %v3939_v25  ;;  %2510 = vmatprep.subr.bf16.mxu1 %v3944_v27  ;;  %v4029_v25 = vld [vmem:[#allocation5 + $0x800] ss:$8 sps:$4 sm:$0xff]   ;;  %v110_v27 = vpack.c.bf16 %v86_v22, %v86_v22 }
  0xd2   :  { %2715 = vmatprep.subr.bf16.mxu0 %v3947_v28  ;;  %v79_v28 = vld [vmem:[#allocation2 + $0x38] sm:$0xff]  ;;  %v89_v29 = vld [vmem:[#allocation2 + $0x88] sm:$0xff] }
  0xd3   :  { %v4110_v22 = vld [vmem:[#allocation5 + $0x3e0] ss:$8 sps:$4 sm:$0xff]  }
  0xd4   :  { %2511 = vmatpush1.bf16.msra.mxu1 %v3942_v30  ;;  %v4034_v30 = vld [vmem:[#allocation5 + $0x314] ss:$8 sps:$4 sm:$0xff]  }
  0xd5   :  { %2716 = vmatpush1.bf16.msra.mxu0 %v3945_v31  ;;  %2512 = vmatprep.subr.bf16.mxu1 %v3950_v32  ;;  %v4037_v31 = vld [vmem:[#allocation5 + $0x814] ss:$8 sps:$4 sm:$0xff]   ;;  %v103_v32 = vpack.c.bf16 %v79_v28, %v79_v28  ;;  %v4124_v28 = vld [vmem:[#allocation5 + $0x404] ss:$8 sps:$4 sm:$0xff]  }
  0xd6   :  { %2717 = vmatprep.subr.bf16.mxu0 %v3953_v33  ;;  %v113_v33 = vpack.c.bf16 %v89_v29, %v89_v29  ;;  %v4127_v29 = vld [vmem:[#allocation5 + $0x904] ss:$8 sps:$4 sm:$0xff]  }
  0xd8   :  { %2513 = vmatpush1.bf16.msra.mxu1 %v3948_v34  ;;  %v4032_v34 = vld [vmem:[#allocation5 + $0x310] ss:$8 sps:$4 sm:$0xff]  }
  0xd9   :  { %2718 = vmatpush1.bf16.msra.mxu0 %v3951_v35  ;;  %2514 = vmatprep.subr.bf16.mxu1 %v3956_v36  ;;  %v4035_v35 = vld [vmem:[#allocation5 + $0x810] ss:$8 sps:$4 sm:$0xff]   ;;  %v4040_v36 = vld [vmem:[#allocation5 + $0x324] ss:$8 sps:$4 sm:$0xff]  }
  0xda   :  { %2719 = vmatprep.subr.bf16.mxu0 %v3959_v37  ;;  %v4043_v37 = vld [vmem:[#allocation5 + $0x824] ss:$8 sps:$4 sm:$0xff]  }
  0xdc   :  { %2515 = vmatpush1.bf16.msra.mxu1 %v3954_v38  ;;  %v4038_v38 = vld [vmem:[#allocation5 + $0x320] ss:$8 sps:$4 sm:$0xff]  }
  0xdd   :  { %2720 = vmatpush1.bf16.msra.mxu0 %v3957_v39  ;;  %2516 = vmatprep.subr.bf16.mxu1 %v3962_v40  ;;  %v4041_v39 = vld [vmem:[#allocation5 + $0x820] ss:$8 sps:$4 sm:$0xff]   ;;  %v4046_v40 = vld [vmem:[#allocation5 + $0x334] ss:$8 sps:$4 sm:$0xff]  }
  0xde   :  { %2721 = vmatprep.subr.bf16.mxu0 %v3965_v41  ;;  %v4049_v41 = vld [vmem:[#allocation5 + $0x834] ss:$8 sps:$4 sm:$0xff]  }
  0xe0   :  { %2517 = vmatpush1.bf16.msra.mxu1 %v3960_v42  ;;  %v4044_v42 = vld [vmem:[#allocation5 + $0x330] ss:$8 sps:$4 sm:$0xff]  }
  0xe1   :  { %2722 = vmatpush1.bf16.msra.mxu0 %v3963_v43  ;;  %2518 = vmatprep.subr.bf16.mxu1 %v3968_v44  ;;  %v4047_v43 = vld [vmem:[#allocation5 + $0x830] ss:$8 sps:$4 sm:$0xff]   ;;  %v4052_v44 = vld [vmem:[#allocation5 + $0x344] ss:$8 sps:$4 sm:$0xff]  }
  0xe2   :  { %2723 = vmatprep.subr.bf16.mxu0 %v3971_v45  ;;  %v4055_v45 = vld [vmem:[#allocation5 + $0x844] ss:$8 sps:$4 sm:$0xff]  }
  0xe4   :  { %2519 = vmatpush1.bf16.msra.mxu1 %v3966_v46  ;;  %v4050_v46 = vld [vmem:[#allocation5 + $0x340] ss:$8 sps:$4 sm:$0xff]  }
  0xe5   :  { %2724 = vmatpush1.bf16.msra.mxu0 %v3969_v47  ;;  %2520 = vmatprep.subr.bf16.mxu1 %v3974_v48  ;;  %v4053_v47 = vld [vmem:[#allocation5 + $0x840] ss:$8 sps:$4 sm:$0xff]   ;;  %v4058_v48 = vld [vmem:[#allocation5 + $0x354] ss:$8 sps:$4 sm:$0xff]  }
  0xe6   :  { %2725 = vmatprep.subr.bf16.mxu0 %v3977_v49  ;;  %v4061_v49 = vld [vmem:[#allocation5 + $0x854] ss:$8 sps:$4 sm:$0xff]  }
  0xe8   :  { %2521 = vmatpush1.bf16.msra.mxu1 %v3972_v50  ;;  %v4056_v50 = vld [vmem:[#allocation5 + $0x350] ss:$8 sps:$4 sm:$0xff]  }
  0xe9   :  { %2726 = vmatpush1.bf16.msra.mxu0 %v3975_v51  ;;  %2522 = vmatprep.subr.bf16.mxu1 %v3980_v52  ;;  %v4059_v51 = vld [vmem:[#allocation5 + $0x850] ss:$8 sps:$4 sm:$0xff]   ;;  %v4064_v52 = vld [vmem:[#allocation5 + $0x364] ss:$8 sps:$4 sm:$0xff]  }
  0xea   :  { %2727 = vmatprep.subr.bf16.mxu0 %v3983_v53  ;;  %v4067_v53 = vld [vmem:[#allocation5 + $0x864] ss:$8 sps:$4 sm:$0xff]  }
  0xec   :  { %2523 = vmatpush1.bf16.msra.mxu1 %v3978_v54  ;;  %v4062_v54 = vld [vmem:[#allocation5 + $0x360] ss:$8 sps:$4 sm:$0xff]  }
  0xed   :  { %2728 = vmatpush1.bf16.msra.mxu0 %v3981_v55  ;;  %2524 = vmatprep.subr.bf16.mxu1 %v3986_v56  ;;  %v4065_v55 = vld [vmem:[#allocation5 + $0x860] ss:$8 sps:$4 sm:$0xff]   ;;  %v4070_v56 = vld [vmem:[#allocation5 + $0x374] ss:$8 sps:$4 sm:$0xff]  }
  0xee   :  { %2729 = vmatprep.subr.bf16.mxu0 %v3989_v57  ;;  %v4073_v57 = vld [vmem:[#allocation5 + $0x874] ss:$8 sps:$4 sm:$0xff]  }
  0xf0   :  { %2525 = vmatpush1.bf16.msra.mxu1 %v3984_v58  ;;  %v4068_v58 = vld [vmem:[#allocation5 + $0x370] ss:$8 sps:$4 sm:$0xff]  }
  0xf1   :  { %2730 = vmatpush1.bf16.msra.mxu0 %v3987_v59  ;;  %2526 = vmatprep.subr.bf16.mxu1 %v3992_v60  ;;  %v4071_v59 = vld [vmem:[#allocation5 + $0x870] ss:$8 sps:$4 sm:$0xff]   ;;  %v4076_v60 = vld [vmem:[#allocation5 + $0x384] ss:$8 sps:$4 sm:$0xff]  }
  0xf2   :  { %2731 = vmatprep.subr.bf16.mxu0 %v3995_v61  ;;  %v4079_v61 = vld [vmem:[#allocation5 + $0x884] ss:$8 sps:$4 sm:$0xff]  }
  0xf4   :  { %2527 = vmatpush1.bf16.msra.mxu1 %v3990_v62  ;;  %v4074_v62 = vld [vmem:[#allocation5 + $0x380] ss:$8 sps:$4 sm:$0xff]  }
  0xf5   :  { %2732 = vmatpush1.bf16.msra.mxu0 %v3993_v63  ;;  %2528 = vmatprep.subr.bf16.mxu1 %v3998_v0  ;;  %v4077_v63 = vld [vmem:[#allocation5 + $0x880] ss:$8 sps:$4 sm:$0xff]   ;;  %v4082_v0 = vld [vmem:[#allocation5 + $0x394] ss:$8 sps:$4 sm:$0xff]  }
  0xf6   :  { %2733 = vmatprep.subr.bf16.mxu0 %v4001_v1  ;;  %v4085_v1 = vld [vmem:[#allocation5 + $0x894] ss:$8 sps:$4 sm:$0xff]  }
  0xf8   :  { %2529 = vmatpush1.bf16.msra.mxu1 %v3996_v2  ;;  %v4080_v2 = vld [vmem:[#allocation5 + $0x390] ss:$8 sps:$4 sm:$0xff]  }
  0xf9   :  { %2734 = vmatpush1.bf16.msra.mxu0 %v3999_v3  ;;  %2530 = vmatprep.subr.bf16.mxu1 %v4004_v4  ;;  %v4083_v3 = vld [vmem:[#allocation5 + $0x890] ss:$8 sps:$4 sm:$0xff]   ;;  %v4088_v4 = vld [vmem:[#allocation5 + $0x3a4] ss:$8 sps:$4 sm:$0xff]  }
  0xfa   :  { %2735 = vmatprep.subr.bf16.mxu0 %v4007_v5  ;;  %v4091_v5 = vld [vmem:[#allocation5 + $0x8a4] ss:$8 sps:$4 sm:$0xff]  }
  0xfc   :  { %2531 = vmatpush1.bf16.msra.mxu1 %v4002_v6  ;;  %v4086_v6 = vld [vmem:[#allocation5 + $0x3a0] ss:$8 sps:$4 sm:$0xff]  }
  0xfd   :  { %2736 = vmatpush1.bf16.msra.mxu0 %v4005_v7  ;;  %2532 = vmatprep.subr.bf16.mxu1 %v4010_v8  ;;  %v4089_v7 = vld [vmem:[#allocation5 + $0x8a0] ss:$8 sps:$4 sm:$0xff]   ;;  %v4094_v8 = vld [vmem:[#allocation5 + $0x3b4] ss:$8 sps:$4 sm:$0xff]  }
  0xfe   :  { %2737 = vmatprep.subr.bf16.mxu0 %v4013_v9  ;;  %v4097_v9 = vld [vmem:[#allocation5 + $0x8b4] ss:$8 sps:$4 sm:$0xff]  }
 0x100   :  { %2533 = vmatpush1.bf16.msra.mxu1 %v4008_v10  ;;  %v4092_v10 = vld [vmem:[#allocation5 + $0x3b0] ss:$8 sps:$4 sm:$0xff]  }
 0x101   :  { %2738 = vmatpush1.bf16.msra.mxu0 %v4011_v11  ;;  %2534 = vmatprep.subr.bf16.mxu1 %v4016_v12  ;;  %v4095_v11 = vld [vmem:[#allocation5 + $0x8b0] ss:$8 sps:$4 sm:$0xff]   ;;  %v4100_v12 = vld [vmem:[#allocation5 + $0x3c4] ss:$8 sps:$4 sm:$0xff]  }
 0x102   :  { %2739 = vmatprep.subr.bf16.mxu0 %v4019_v13  ;;  %v4103_v13 = vld [vmem:[#allocation5 + $0x8c4] ss:$8 sps:$4 sm:$0xff]  }
 0x104   :  { %2535 = vmatpush1.bf16.msra.mxu1 %v4014_v14  ;;  %v4098_v14 = vld [vmem:[#allocation5 + $0x3c0] ss:$8 sps:$4 sm:$0xff]  }
 0x105   :  { %2740 = vmatpush1.bf16.msra.mxu0 %v4017_v15  ;;  %2536 = vmatprep.subr.bf16.mxu1 %v4022_v16  ;;  %v4101_v15 = vld [vmem:[#allocation5 + $0x8c0] ss:$8 sps:$4 sm:$0xff]   ;;  %v4106_v16 = vld [vmem:[#allocation5 + $0x3d4] ss:$8 sps:$4 sm:$0xff]  }
 0x106   :  { %2741 = vmatprep.subr.bf16.mxu0 %v4025_v17  ;;  %v4109_v17 = vld [vmem:[#allocation5 + $0x8d4] ss:$8 sps:$4 sm:$0xff]  }
 0x108   :  { %2537 = vmatpush1.bf16.msra.mxu1 %v4020_v18  ;;  %v4104_v18 = vld [vmem:[#allocation5 + $0x3d0] ss:$8 sps:$4 sm:$0xff]  }
 0x109   :  { %2742 = vmatpush1.bf16.msra.mxu0 %v4023_v19  ;;  %2547 = vmatprep.subr.bf16.mxu1 %v4028_v20  ;;  %v4107_v19 = vld [vmem:[#allocation5 + $0x8d0] ss:$8 sps:$4 sm:$0xff]   ;;  %v4112_v20 = vld [vmem:[#allocation5 + $0x3e4] ss:$8 sps:$4 sm:$0xff]  }
 0x10a   :  { %2752 = vmatprep.subr.bf16.mxu0 %v4031_v23  ;;  %v4113_v23 = vld [vmem:[#allocation5 + $0x8e0] ss:$8 sps:$4 sm:$0xff]  }
 0x10b   :  { %2539 = vmatmul.mubr.bf16.vlgmr.msra.gmra.mrb[0].mxu1 %v100_v26  ;;  %v4116_v26 = vld [vmem:[#allocation5 + $0x3f0] ss:$8 sps:$4 sm:$0xff]  }
 0x10c   :  { %2744 = vmatmul.mubr.bf16.vlgmr.msra.gmra.mrb[0].mxu0 %v110_v27  ;;  %2548 = vmatpush1.bf16.msra.mxu1 %v4026_v24  ;;  %v4118_v24 = vld [vmem:[#allocation5 + $0x3f4] ss:$8 sps:$4 sm:$0xff]   ;;  %v4119_v27 = vld [vmem:[#allocation5 + $0x8f0] ss:$8 sps:$4 sm:$0xff]  }
 0x10d   :  { %2753 = vmatpush1.bf16.msra.mxu0 %v4029_v25  ;;  %2549 = vmatprep.subr.bf16.mxu1 %v4034_v30  ;;  %v4121_v25 = vld [vmem:[#allocation5 + $0x8f4] ss:$8 sps:$4 sm:$0xff]  }
 0x10e   :  { %2754 = vmatprep.subr.bf16.mxu0 %v4037_v31  ;;  %2579 = vmatprep.mubr.bf16.mxu1 %v103_v32  ;;  %v78_v30 = vld [vmem:[#allocation2 + $0x30] sm:$0xff]  ;;  %v88_v31 = vld [vmem:[#allocation2 + $0x80] sm:$0xff]  ;;  %v81_v32 = vld [vmem:[#allocation2 + $0x48] sm:$0xff] }
 0x10f   :  { %2784 = vmatprep.mubr.bf16.mxu0 %v113_v33  ;;  %v91_v33 = vld [vmem:[#allocation2 + $0x98] sm:$0xff] }
 0x110   :  { %2550 = vmatpush1.bf16.msra.mxu1 %v4032_v34  ;;  %v102_v34 = vpack.c.bf16 %v78_v30, %v78_v30  ;;  %v4206_v30 = vld [vmem:[#allocation5 + $0x4e0] ss:$8 sps:$4 sm:$0xff]  }
 0x111   :  { %2755 = vmatpush1.bf16.msra.mxu0 %v4035_v35  ;;  %2551 = vmatprep.subr.bf16.mxu1 %v4040_v36  ;;  %v112_v35 = vpack.c.bf16 %v88_v31, %v88_v31  ;;  %v4122_v36 = vld [vmem:[#allocation5 + $0x400] ss:$8 sps:$4 sm:$0xff]  }
 0x112   :  { %2756 = vmatprep.subr.bf16.mxu0 %v4043_v37  ;;  %v4125_v37 = vld [vmem:[#allocation5 + $0x900] ss:$8 sps:$4 sm:$0xff]  }
 0x113   :  { %v4209_v31 = vld [vmem:[#allocation5 + $0x9e0] ss:$8 sps:$4 sm:$0xff]  }
 0x114   :  { %2552 = vmatpush1.bf16.msra.mxu1 %v4038_v38  ;;  %v4130_v38 = vld [vmem:[#allocation5 + $0x414] ss:$8 sps:$4 sm:$0xff]  }
 0x115   :  { %2757 = vmatpush1.bf16.msra.mxu0 %v4041_v39  ;;  %2553 = vmatprep.subr.bf16.mxu1 %v4046_v40  ;;  %v4133_v39 = vld [vmem:[#allocation5 + $0x914] ss:$8 sps:$4 sm:$0xff]   ;;  %v4128_v40 = vld [vmem:[#allocation5 + $0x410] ss:$8 sps:$4 sm:$0xff]  }
 0x116   :  { %2758 = vmatprep.subr.bf16.mxu0 %v4049_v41  ;;  %v4131_v41 = vld [vmem:[#allocation5 + $0x910] ss:$8 sps:$4 sm:$0xff]  }
 0x118   :  { %2554 = vmatpush1.bf16.msra.mxu1 %v4044_v42  ;;  %v105_v42 = vpack.c.bf16 %v81_v32, %v81_v32  ;;  %v4214_v32 = vld [vmem:[#allocation5 + $0x4f4] ss:$8 sps:$4 sm:$0xff]  }
 0x119   :  { %2759 = vmatpush1.bf16.msra.mxu0 %v4047_v43  ;;  %2555 = vmatprep.subr.bf16.mxu1 %v4052_v44  ;;  %v115_v43 = vpack.c.bf16 %v91_v33, %v91_v33  ;;  %v4136_v44 = vld [vmem:[#allocation5 + $0x424] ss:$8 sps:$4 sm:$0xff]   ;;  %v4217_v33 = vld [vmem:[#allocation5 + $0x9f4] ss:$8 sps:$4 sm:$0xff]  }
 0x11a   :  { %2760 = vmatprep.subr.bf16.mxu0 %v4055_v45  ;;  %v4139_v45 = vld [vmem:[#allocation5 + $0x924] ss:$8 sps:$4 sm:$0xff]  }
 0x11c   :  { %2556 = vmatpush1.bf16.msra.mxu1 %v4050_v46  ;;  %v4134_v46 = vld [vmem:[#allocation5 + $0x420] ss:$8 sps:$4 sm:$0xff]  }
 0x11d   :  { %2761 = vmatpush1.bf16.msra.mxu0 %v4053_v47  ;;  %2557 = vmatprep.subr.bf16.mxu1 %v4058_v48  ;;  %v4137_v47 = vld [vmem:[#allocation5 + $0x920] ss:$8 sps:$4 sm:$0xff]   ;;  %v4142_v48 = vld [vmem:[#allocation5 + $0x434] ss:$8 sps:$4 sm:$0xff]  }
 0x11e   :  { %2762 = vmatprep.subr.bf16.mxu0 %v4061_v49  ;;  %v4145_v49 = vld [vmem:[#allocation5 + $0x934] ss:$8 sps:$4 sm:$0xff]  }
 0x120   :  { %2558 = vmatpush1.bf16.msra.mxu1 %v4056_v50  ;;  %v4140_v50 = vld [vmem:[#allocation5 + $0x430] ss:$8 sps:$4 sm:$0xff]  }
 0x121   :  { %2763 = vmatpush1.bf16.msra.mxu0 %v4059_v51  ;;  %2559 = vmatprep.subr.bf16.mxu1 %v4064_v52  ;;  %v4143_v51 = vld [vmem:[#allocation5 + $0x930] ss:$8 sps:$4 sm:$0xff]   ;;  %v4148_v52 = vld [vmem:[#allocation5 + $0x444] ss:$8 sps:$4 sm:$0xff]  }
 0x122   :  { %2764 = vmatprep.subr.bf16.mxu0 %v4067_v53  ;;  %v4151_v53 = vld [vmem:[#allocation5 + $0x944] ss:$8 sps:$4 sm:$0xff]  }
 0x124   :  { %2560 = vmatpush1.bf16.msra.mxu1 %v4062_v54  ;;  %v4146_v54 = vld [vmem:[#allocation5 + $0x440] ss:$8 sps:$4 sm:$0xff]  }
 0x125   :  { %2765 = vmatpush1.bf16.msra.mxu0 %v4065_v55  ;;  %2561 = vmatprep.subr.bf16.mxu1 %v4070_v56  ;;  %v4149_v55 = vld [vmem:[#allocation5 + $0x940] ss:$8 sps:$4 sm:$0xff]   ;;  %v4154_v56 = vld [vmem:[#allocation5 + $0x454] ss:$8 sps:$4 sm:$0xff]  }
 0x126   :  { %2766 = vmatprep.subr.bf16.mxu0 %v4073_v57  ;;  %v4157_v57 = vld [vmem:[#allocation5 + $0x954] ss:$8 sps:$4 sm:$0xff]  }
 0x128   :  { %2562 = vmatpush1.bf16.msra.mxu1 %v4068_v58  ;;  %v4152_v58 = vld [vmem:[#allocation5 + $0x450] ss:$8 sps:$4 sm:$0xff]  }
 0x129   :  { %2767 = vmatpush1.bf16.msra.mxu0 %v4071_v59  ;;  %2563 = vmatprep.subr.bf16.mxu1 %v4076_v60  ;;  %v4155_v59 = vld [vmem:[#allocation5 + $0x950] ss:$8 sps:$4 sm:$0xff]   ;;  %v4160_v60 = vld [vmem:[#allocation5 + $0x464] ss:$8 sps:$4 sm:$0xff]  }
 0x12a   :  { %2768 = vmatprep.subr.bf16.mxu0 %v4079_v61  ;;  %v4163_v61 = vld [vmem:[#allocation5 + $0x964] ss:$8 sps:$4 sm:$0xff]  }
 0x12c   :  { %2564 = vmatpush1.bf16.msra.mxu1 %v4074_v62  ;;  %v4158_v62 = vld [vmem:[#allocation5 + $0x460] ss:$8 sps:$4 sm:$0xff]  }
 0x12d   :  { %2769 = vmatpush1.bf16.msra.mxu0 %v4077_v63  ;;  %2565 = vmatprep.subr.bf16.mxu1 %v4082_v0  ;;  %v4161_v63 = vld [vmem:[#allocation5 + $0x960] ss:$8 sps:$4 sm:$0xff]   ;;  %v4166_v0 = vld [vmem:[#allocation5 + $0x474] ss:$8 sps:$4 sm:$0xff]  }
 0x12e   :  { %2770 = vmatprep.subr.bf16.mxu0 %v4085_v1  ;;  %v4169_v1 = vld [vmem:[#allocation5 + $0x974] ss:$8 sps:$4 sm:$0xff]  }
 0x130   :  { %2566 = vmatpush1.bf16.msra.mxu1 %v4080_v2  ;;  %v4164_v2 = vld [vmem:[#allocation5 + $0x470] ss:$8 sps:$4 sm:$0xff]  }
 0x131   :  { %2771 = vmatpush1.bf16.msra.mxu0 %v4083_v3  ;;  %2567 = vmatprep.subr.bf16.mxu1 %v4088_v4  ;;  %v4167_v3 = vld [vmem:[#allocation5 + $0x970] ss:$8 sps:$4 sm:$0xff]   ;;  %v4172_v4 = vld [vmem:[#allocation5 + $0x484] ss:$8 sps:$4 sm:$0xff]  }
 0x132   :  { %2772 = vmatprep.subr.bf16.mxu0 %v4091_v5  ;;  %v4175_v5 = vld [vmem:[#allocation5 + $0x984] ss:$8 sps:$4 sm:$0xff]  }
 0x134   :  { %2568 = vmatpush1.bf16.msra.mxu1 %v4086_v6  ;;  %v4170_v6 = vld [vmem:[#allocation5 + $0x480] ss:$8 sps:$4 sm:$0xff]  }
 0x135   :  { %2773 = vmatpush1.bf16.msra.mxu0 %v4089_v7  ;;  %2569 = vmatprep.subr.bf16.mxu1 %v4094_v8  ;;  %v4173_v7 = vld [vmem:[#allocation5 + $0x980] ss:$8 sps:$4 sm:$0xff]   ;;  %v4178_v8 = vld [vmem:[#allocation5 + $0x494] ss:$8 sps:$4 sm:$0xff]  }
 0x136   :  { %2774 = vmatprep.subr.bf16.mxu0 %v4097_v9  ;;  %v4181_v9 = vld [vmem:[#allocation5 + $0x994] ss:$8 sps:$4 sm:$0xff]  }
 0x138   :  { %2570 = vmatpush1.bf16.msra.mxu1 %v4092_v10  ;;  %v4176_v10 = vld [vmem:[#allocation5 + $0x490] ss:$8 sps:$4 sm:$0xff]  }
 0x139   :  { %2775 = vmatpush1.bf16.msra.mxu0 %v4095_v11  ;;  %2571 = vmatprep.subr.bf16.mxu1 %v4100_v12  ;;  %v4179_v11 = vld [vmem:[#allocation5 + $0x990] ss:$8 sps:$4 sm:$0xff]   ;;  %v4184_v12 = vld [vmem:[#allocation5 + $0x4a4] ss:$8 sps:$4 sm:$0xff]  }
 0x13a   :  { %2776 = vmatprep.subr.bf16.mxu0 %v4103_v13  ;;  %v4187_v13 = vld [vmem:[#allocation5 + $0x9a4] ss:$8 sps:$4 sm:$0xff]  }
 0x13c   :  { %2572 = vmatpush1.bf16.msra.mxu1 %v4098_v14  ;;  %v4182_v14 = vld [vmem:[#allocation5 + $0x4a0] ss:$8 sps:$4 sm:$0xff]  }
 0x13d   :  { %2777 = vmatpush1.bf16.msra.mxu0 %v4101_v15  ;;  %2573 = vmatprep.subr.bf16.mxu1 %v4106_v16  ;;  %v4185_v15 = vld [vmem:[#allocation5 + $0x9a0] ss:$8 sps:$4 sm:$0xff]   ;;  %v4190_v16 = vld [vmem:[#allocation5 + $0x4b4] ss:$8 sps:$4 sm:$0xff]  }
 0x13e   :  { %2778 = vmatprep.subr.bf16.mxu0 %v4109_v17  ;;  %v4193_v17 = vld [vmem:[#allocation5 + $0x9b4] ss:$8 sps:$4 sm:$0xff]  }
 0x140   :  { %2574 = vmatpush1.bf16.msra.mxu1 %v4104_v18  ;;  %v4188_v18 = vld [vmem:[#allocation5 + $0x4b0] ss:$8 sps:$4 sm:$0xff]  }
 0x141   :  { %2779 = vmatpush1.bf16.msra.mxu0 %v4107_v19  ;;  %2575 = vmatprep.subr.bf16.mxu1 %v4112_v20  ;;  %v4191_v19 = vld [vmem:[#allocation5 + $0x9b0] ss:$8 sps:$4 sm:$0xff]   ;;  %v4196_v20 = vld [vmem:[#allocation5 + $0x4c4] ss:$8 sps:$4 sm:$0xff]  }
 0x142   :  { %2780 = vmatprep.subr.bf16.mxu0 %v4115_v21  ;;  %v4199_v21 = vld [vmem:[#allocation5 + $0x9c4] ss:$8 sps:$4 sm:$0xff]  }
 0x144   :  { %2576 = vmatpush1.bf16.msra.mxu1 %v4110_v22  ;;  %v4194_v22 = vld [vmem:[#allocation5 + $0x4c0] ss:$8 sps:$4 sm:$0xff]  }
 0x145   :  { %2781 = vmatpush1.bf16.msra.mxu0 %v4113_v23  ;;  %2577 = vmatprep.subr.bf16.mxu1 %v4118_v24  ;;  %v4197_v23 = vld [vmem:[#allocation5 + $0x9c0] ss:$8 sps:$4 sm:$0xff]   ;;  %v4202_v24 = vld [vmem:[#allocation5 + $0x4d4] ss:$8 sps:$4 sm:$0xff]  }
 0x146   :  { %2782 = vmatprep.subr.bf16.mxu0 %v4121_v25  ;;  %v4205_v25 = vld [vmem:[#allocation5 + $0x9d4] ss:$8 sps:$4 sm:$0xff]  }
 0x148   :  { %2578 = vmatpush1.bf16.msra.mxu1 %v4116_v26  ;;  %v4200_v26 = vld [vmem:[#allocation5 + $0x4d0] ss:$8 sps:$4 sm:$0xff]  }
 0x149   :  { %2783 = vmatpush1.bf16.msra.mxu0 %v4119_v27  ;;  %2588 = vmatprep.subr.bf16.mxu1 %v4124_v28  ;;  %v4203_v27 = vld [vmem:[#allocation5 + $0x9d0] ss:$8 sps:$4 sm:$0xff]   ;;  %v4208_v28 = vld [vmem:[#allocation5 + $0x4e4] ss:$8 sps:$4 sm:$0xff]  }
 0x14a   :  { %2793 = vmatprep.subr.bf16.mxu0 %v4127_v29  ;;  %v4211_v29 = vld [vmem:[#allocation5 + $0x9e4] ss:$8 sps:$4 sm:$0xff]  }
 0x14b   :  { %2580 = vmatmul.mubr.bf16.vlgmr.msra.gmra.mrb[0].mxu1 %v102_v34  ;;  %v4212_v34 = vld [vmem:[#allocation5 + $0x4f0] ss:$8 sps:$4 sm:$0xff]  }
 0x14c   :  { %2785 = vmatmul.mubr.bf16.vlgmr.msra.gmra.mrb[0].mxu0 %v112_v35  ;;  %2589 = vmatpush1.bf16.msra.mxu1 %v4122_v36  ;;  %v4215_v35 = vld [vmem:[#allocation5 + $0x9f0] ss:$8 sps:$4 sm:$0xff]   ;;  %v80_v36 = vld [vmem:[#allocation2 + $0x40] sm:$0xff] }
 0x14d   :  { %2794 = vmatpush1.bf16.msra.mxu0 %v4125_v37  ;;  %2590 = vmatprep.subr.bf16.mxu1 %v4130_v38  ;;  %v90_v37 = vld [vmem:[#allocation2 + $0x90] sm:$0xff]  ;;  %v4220_v38 = vld [vmem:[#allocation5 + $0xa04] ss:$8 sps:$4 sm:$0xff]  }
 0x14e   :  { %2795 = vmatprep.subr.bf16.mxu0 %v4133_v39  ;;  %2620 = vmatprep.mubr.bf16.mxu1 %v105_v42  ;;  %v93_v39 = vld [vmem:[#allocation2 + $0xa8] sm:$0xff] }
 0x14f   :  { %2825 = vmatprep.mubr.bf16.mxu0 %v115_v43  ;;  %v4218_v42 = vld [vmem:[#allocation5 + $0xa00] ss:$8 sps:$4 sm:$0xff]   ;;  %v117_v43 = vpack.c.bf16 %v93_v39, %v93_v39  ;;  %v4320_v39 = vld [vmem:[#allocation7 + $0x58] sm:$0xff]  }
 0x150   :  { %2591 = vmatpush1.bf16.msra.mxu1 %v4128_v40  ;;  %v104_v40 = vpack.c.bf16 %v80_v36, %v80_v36  ;;  %v4290_v36 = vld [vmem:[#allocation5 + $0xb80] ss:$8 sps:$4 sm:$0xff]  }
 0x151   :  { %2796 = vmatpush1.bf16.msra.mxu0 %v4131_v41  ;;  %2592 = vmatprep.subr.bf16.mxu1 %v4136_v44  ;;  %v114_v41 = vpack.c.bf16 %v90_v37, %v90_v37  ;;  %v4223_v44 = vld [vmem:[#allocation5 + $0xa14] ss:$8 sps:$4 sm:$0xff]  }
 0x152   :  { %2797 = vmatprep.subr.bf16.mxu0 %v4139_v45  ;;  %v4221_v45 = vld [vmem:[#allocation5 + $0xa10] ss:$8 sps:$4 sm:$0xff]  }
 0x153   :  { %v4319_v37 = vld [vmem:[#allocation7 + $0x10] sm:$0xff]  }
 0x154   :  { %2593 = vmatpush1.bf16.msra.mxu1 %v4134_v46  ;;  %v4226_v46 = vld [vmem:[#allocation5 + $0xa24] ss:$8 sps:$4 sm:$0xff]  }
 0x155   :  { %2798 = vmatpush1.bf16.msra.mxu0 %v4137_v47  ;;  %2594 = vmatprep.subr.bf16.mxu1 %v4142_v48  ;;  %v4224_v47 = vld [vmem:[#allocation5 + $0xa20] ss:$8 sps:$4 sm:$0xff]   ;;  %v4229_v48 = vld [vmem:[#allocation5 + $0xa34] ss:$8 sps:$4 sm:$0xff]  }
 0x156   :  { %2799 = vmatprep.subr.bf16.mxu0 %v4145_v49  ;;  %v4227_v49 = vld [vmem:[#allocation5 + $0xa30] ss:$8 sps:$4 sm:$0xff]  }
 0x158   :  { %2595 = vmatpush1.bf16.msra.mxu1 %v4140_v50  ;;  %v4232_v50 = vld [vmem:[#allocation5 + $0xa44] ss:$8 sps:$4 sm:$0xff]  }
 0x159   :  { %2800 = vmatpush1.bf16.msra.mxu0 %v4143_v51  ;;  %2596 = vmatprep.subr.bf16.mxu1 %v4148_v52  ;;  %v4230_v51 = vld [vmem:[#allocation5 + $0xa40] ss:$8 sps:$4 sm:$0xff]   ;;  %v4235_v52 = vld [vmem:[#allocation5 + $0xa54] ss:$8 sps:$4 sm:$0xff]  }
 0x15a   :  { %2801 = vmatprep.subr.bf16.mxu0 %v4151_v53  ;;  %v4233_v53 = vld [vmem:[#allocation5 + $0xa50] ss:$8 sps:$4 sm:$0xff]  }
 0x15c   :  { %2597 = vmatpush1.bf16.msra.mxu1 %v4146_v54  ;;  %v4238_v54 = vld [vmem:[#allocation5 + $0xa64] ss:$8 sps:$4 sm:$0xff]  }
 0x15d   :  { %2802 = vmatpush1.bf16.msra.mxu0 %v4149_v55  ;;  %2598 = vmatprep.subr.bf16.mxu1 %v4154_v56  ;;  %v4236_v55 = vld [vmem:[#allocation5 + $0xa60] ss:$8 sps:$4 sm:$0xff]   ;;  %v4241_v56 = vld [vmem:[#allocation5 + $0xa74] ss:$8 sps:$4 sm:$0xff]  }
 0x15e   :  { %2803 = vmatprep.subr.bf16.mxu0 %v4157_v57  ;;  %v4239_v57 = vld [vmem:[#allocation5 + $0xa70] ss:$8 sps:$4 sm:$0xff]  }
 0x160   :  { %2599 = vmatpush1.bf16.msra.mxu1 %v4152_v58  ;;  %v4244_v58 = vld [vmem:[#allocation5 + $0xa84] ss:$8 sps:$4 sm:$0xff]  }
 0x161   :  { %2804 = vmatpush1.bf16.msra.mxu0 %v4155_v59  ;;  %2600 = vmatprep.subr.bf16.mxu1 %v4160_v60  ;;  %v4242_v59 = vld [vmem:[#allocation5 + $0xa80] ss:$8 sps:$4 sm:$0xff]   ;;  %v4247_v60 = vld [vmem:[#allocation5 + $0xa94] ss:$8 sps:$4 sm:$0xff]  }
 0x162   :  { %2805 = vmatprep.subr.bf16.mxu0 %v4163_v61  ;;  %v4245_v61 = vld [vmem:[#allocation5 + $0xa90] ss:$8 sps:$4 sm:$0xff]  }
 0x164   :  { %2601 = vmatpush1.bf16.msra.mxu1 %v4158_v62  ;;  %v4250_v62 = vld [vmem:[#allocation5 + $0xaa4] ss:$8 sps:$4 sm:$0xff]  }
 0x165   :  { %2806 = vmatpush1.bf16.msra.mxu0 %v4161_v63  ;;  %2602 = vmatprep.subr.bf16.mxu1 %v4166_v0  ;;  %v4248_v63 = vld [vmem:[#allocation5 + $0xaa0] ss:$8 sps:$4 sm:$0xff]   ;;  %v4253_v0 = vld [vmem:[#allocation5 + $0xab4] ss:$8 sps:$4 sm:$0xff]  }
 0x166   :  { %2807 = vmatprep.subr.bf16.mxu0 %v4169_v1  ;;  %v4251_v1 = vld [vmem:[#allocation5 + $0xab0] ss:$8 sps:$4 sm:$0xff]  }
 0x168   :  { %2603 = vmatpush1.bf16.msra.mxu1 %v4164_v2  ;;  %v4256_v2 = vld [vmem:[#allocation5 + $0xac4] ss:$8 sps:$4 sm:$0xff]  }
 0x169   :  { %2808 = vmatpush1.bf16.msra.mxu0 %v4167_v3  ;;  %2604 = vmatprep.subr.bf16.mxu1 %v4172_v4  ;;  %v4254_v3 = vld [vmem:[#allocation5 + $0xac0] ss:$8 sps:$4 sm:$0xff]   ;;  %v4259_v4 = vld [vmem:[#allocation5 + $0xad4] ss:$8 sps:$4 sm:$0xff]  }
 0x16a   :  { %2809 = vmatprep.subr.bf16.mxu0 %v4175_v5  ;;  %v4257_v5 = vld [vmem:[#allocation5 + $0xad0] ss:$8 sps:$4 sm:$0xff]  }
 0x16c   :  { %2605 = vmatpush1.bf16.msra.mxu1 %v4170_v6  ;;  %v4262_v6 = vld [vmem:[#allocation5 + $0xae4] ss:$8 sps:$4 sm:$0xff]  }
 0x16d   :  { %2810 = vmatpush1.bf16.msra.mxu0 %v4173_v7  ;;  %2606 = vmatprep.subr.bf16.mxu1 %v4178_v8  ;;  %v4260_v7 = vld [vmem:[#allocation5 + $0xae0] ss:$8 sps:$4 sm:$0xff]   ;;  %v4265_v8 = vld [vmem:[#allocation5 + $0xaf4] ss:$8 sps:$4 sm:$0xff]  }
 0x16e   :  { %2811 = vmatprep.subr.bf16.mxu0 %v4181_v9  ;;  %v4263_v9 = vld [vmem:[#allocation5 + $0xaf0] ss:$8 sps:$4 sm:$0xff]  }
 0x170   :  { %2607 = vmatpush1.bf16.msra.mxu1 %v4176_v10  ;;  %v92_v10 = vld [vmem:[#allocation2 + $0xa0] sm:$0xff] }
 0x171   :  { %2812 = vmatpush1.bf16.msra.mxu0 %v4179_v11  ;;  %2608 = vmatprep.subr.bf16.mxu1 %v4184_v12  ;;  %v4268_v11 = vld [vmem:[#allocation5 + $0xb04] ss:$8 sps:$4 sm:$0xff]   ;;  %v95_v12 = vld [vmem:[#allocation2 + $0xb8] sm:$0xff] }
 0x172   :  { %2813 = vmatprep.subr.bf16.mxu0 %v4187_v13  ;;  %v116_v13 = vpack.c.bf16 %v92_v10, %v92_v10 }
 0x174   :  { %2609 = vmatpush1.bf16.msra.mxu1 %v4182_v14  ;;  %v4266_v14 = vld [vmem:[#allocation5 + $0xb00] ss:$8 sps:$4 sm:$0xff]  }
 0x175   :  { %2814 = vmatpush1.bf16.msra.mxu0 %v4185_v15  ;;  %2610 = vmatprep.subr.bf16.mxu1 %v4190_v16  ;;  %v119_v15 = vpack.c.bf16 %v95_v12, %v95_v12  ;;  %v4271_v16 = vld [vmem:[#allocation5 + $0xb14] ss:$8 sps:$4 sm:$0xff]  }
 0x176   :  { %2815 = vmatprep.subr.bf16.mxu0 %v4193_v17  ;;  %v4269_v17 = vld [vmem:[#allocation5 + $0xb10] ss:$8 sps:$4 sm:$0xff]  }
 0x178   :  { %2611 = vmatpush1.bf16.msra.mxu1 %v4188_v18  ;;  %v4274_v18 = vld [vmem:[#allocation5 + $0xb24] ss:$8 sps:$4 sm:$0xff]  }
 0x179   :  { %2816 = vmatpush1.bf16.msra.mxu0 %v4191_v19  ;;  %2612 = vmatprep.subr.bf16.mxu1 %v4196_v20  ;;  %v4272_v19 = vld [vmem:[#allocation5 + $0xb20] ss:$8 sps:$4 sm:$0xff]   ;;  %v4277_v20 = vld [vmem:[#allocation5 + $0xb34] ss:$8 sps:$4 sm:$0xff]  }
 0x17a   :  { %2817 = vmatprep.subr.bf16.mxu0 %v4199_v21  ;;  %v4275_v21 = vld [vmem:[#allocation5 + $0xb30] ss:$8 sps:$4 sm:$0xff]  }
 0x17c   :  { %2613 = vmatpush1.bf16.msra.mxu1 %v4194_v22  ;;  %v4280_v22 = vld [vmem:[#allocation5 + $0xb44] ss:$8 sps:$4 sm:$0xff]  }
 0x17d   :  { %2818 = vmatpush1.bf16.msra.mxu0 %v4197_v23  ;;  %2614 = vmatprep.subr.bf16.mxu1 %v4202_v24  ;;  %v4278_v23 = vld [vmem:[#allocation5 + $0xb40] ss:$8 sps:$4 sm:$0xff]   ;;  %v4283_v24 = vld [vmem:[#allocation5 + $0xb54] ss:$8 sps:$4 sm:$0xff]  }
 0x17e   :  { %2819 = vmatprep.subr.bf16.mxu0 %v4205_v25  ;;  %v4281_v25 = vld [vmem:[#allocation5 + $0xb50] ss:$8 sps:$4 sm:$0xff]  }
 0x180   :  { %2615 = vmatpush1.bf16.msra.mxu1 %v4200_v26  ;;  %v4286_v26 = vld [vmem:[#allocation5 + $0xb64] ss:$8 sps:$4 sm:$0xff]  }
 0x181   :  { %2820 = vmatpush1.bf16.msra.mxu0 %v4203_v27  ;;  %2616 = vmatprep.subr.bf16.mxu1 %v4208_v28  ;;  %v4284_v27 = vld [vmem:[#allocation5 + $0xb60] ss:$8 sps:$4 sm:$0xff]   ;;  %v4289_v28 = vld [vmem:[#allocation5 + $0xb74] ss:$8 sps:$4 sm:$0xff]  }
 0x182   :  { %2821 = vmatprep.subr.bf16.mxu0 %v4211_v29  ;;  %v4314_v29 = vld [vmem:[#allocation7 + $0x40] sm:$0xff]  }
 0x184   :  { %2617 = vmatpush1.bf16.msra.mxu1 %v4206_v30  ;;  %v4315_v30 = vld [vmem:[#allocation7] sm:$0xff]  }
 0x185   :  { %2822 = vmatpush1.bf16.msra.mxu0 %v4209_v31  ;;  %2618 = vmatprep.subr.bf16.mxu1 %v4214_v32  ;;  %v4316_v31 = vld [vmem:[#allocation7 + $0x48] sm:$0xff]   ;;  %v4287_v32 = vld [vmem:[#allocation5 + $0xb70] ss:$8 sps:$4 sm:$0xff]  }
 0x186   :  { %2823 = vmatprep.subr.bf16.mxu0 %v4217_v33  ;;  %v4317_v33 = vld [vmem:[#allocation7 + $0x8] sm:$0xff]  }
 0x188   :  { %2619 = vmatpush1.bf16.msra.mxu1 %v4212_v34  ;;  %v4292_v34 = vld [vmem:[#allocation5 + $0xb84] ss:$8 sps:$4 sm:$0xff]  }
 0x189   :  { %2824 = vmatpush1.bf16.msra.mxu0 %v4215_v35  ;;  %3634 = vmatprep.subr.bf16.mxu1 %v4314_v29  ;;  %v4318_v35 = vld [vmem:[#allocation7 + $0x50] sm:$0xff]  }
 0x18a   :  { %2834 = vmatprep.subr.bf16.mxu0 %v4220_v38  ;;  %v4295_v38 = vld [vmem:[#allocation5 + $0xb94] ss:$8 sps:$4 sm:$0xff]  }
 0x18b   :  { %2621 = vmatmul.mubr.bf16.vlgmr.msra.gmra.mrb[0].mxu1 %v104_v40  ;;  %v4293_v40 = vld [vmem:[#allocation5 + $0xb90] ss:$8 sps:$4 sm:$0xff]  }
 0x18c   :  { %2826 = vmatmul.mubr.bf16.vlgmr.msra.gmra.mrb[0].mxu0 %v114_v41  ;;  %3635 = vmatpush3.bf16.msra.mxu1 %v4315_v30  ;;  %v4321_v41 = vld [vmem:[#allocation7 + $0x18] sm:$0xff]   ;;  %v3194_v30 = vlaneseq }
 0x18d   :  { %2835 = vmatpush1.bf16.msra.mxu0 %v4218_v42  ;;  %2866 = vmatprep.mubr.bf16.mxu0 %v117_v43  ;;  %v4298_v42 = vld [vmem:[#allocation5 + $0xba4] ss:$8 sps:$4 sm:$0xff]  }
 0x18e   :  { %2836 = vmatprep.subr.bf16.mxu0 %v4223_v44  ;;  %3636 = vmatprep.subr.bf16.mxu1 %v4316_v31  ;;  %v4322_v43 = vld [vmem:[#allocation7 + $0x60] sm:$0xff]   ;;  %v3195_v31 = vand.u32 127, %v3194_v30 }
 0x18f   :  { %v4296_v44 = vld [vmem:[#allocation5 + $0xba0] ss:$8 sps:$4 sm:$0xff]  }
 0x190   :  { %3637 = vmatpush3.bf16.msra.mxu1 %v4317_v33  ;;  %vm3196_vm1 = vcmp.lt.s32.totalorder %v3195_v31, 10 }
 0x191   :  { %2837 = vmatpush1.bf16.msra.mxu0 %v4221_v45  ;;  %3638 = vmatprep.subr.bf16.mxu1 %v4318_v35  ;;  %v4323_v45 = vld [vmem:[#allocation7 + $0x20] sm:$0xff]  }
 0x192   :  { %2838 = vmatprep.subr.bf16.mxu0 %v4226_v46  ;;  %v4301_v46 = vld [vmem:[#allocation5 + $0xbb4] ss:$8 sps:$4 sm:$0xff]  }
 0x194   :  { %3639 = vmatpush3.bf16.msra.mxu1 %v4319_v37 }
 0x195   :  { %2839 = vmatpush1.bf16.msra.mxu0 %v4224_v47  ;;  %3640 = vmatprep.subr.bf16.mxu1 %v4320_v39  ;;  %v4324_v47 = vld [vmem:[#allocation7 + $0x68] sm:$0xff]  }
 0x196   :  { %2840 = vmatprep.subr.bf16.mxu0 %v4229_v48  ;;  %v4299_v48 = vld [vmem:[#allocation5 + $0xbb0] ss:$8 sps:$4 sm:$0xff]  }
 0x198   :  { %3641 = vmatpush3.bf16.msra.mxu1 %v4321_v41 }
 0x199   :  { %2841 = vmatpush1.bf16.msra.mxu0 %v4227_v49  ;;  %3642 = vmatprep.subr.bf16.mxu1 %v4322_v43  ;;  %v4325_v49 = vld [vmem:[#allocation7 + $0x28] sm:$0xff]  }
 0x19a   :  { %2842 = vmatprep.subr.bf16.mxu0 %v4232_v50  ;;  %v4304_v50 = vld [vmem:[#allocation5 + $0xbc4] ss:$8 sps:$4 sm:$0xff]  }
 0x19c   :  { %3643 = vmatpush3.bf16.msra.mxu1 %v4323_v45 }
 0x19d   :  { %2843 = vmatpush1.bf16.msra.mxu0 %v4230_v51  ;;  %3644 = vmatprep.subr.bf16.mxu1 %v4324_v47  ;;  %v4302_v51 = vld [vmem:[#allocation5 + $0xbc0] ss:$8 sps:$4 sm:$0xff]  }
 0x19e   :  { %2844 = vmatprep.subr.bf16.mxu0 %v4235_v52  ;;  %v4307_v52 = vld [vmem:[#allocation5 + $0xbd4] ss:$8 sps:$4 sm:$0xff]  }
 0x1a0   :  { %3645 = vmatpush3.bf16.msra.mxu1 %v4325_v49 }
 0x1a1   :  { %2845 = vmatpush1.bf16.msra.mxu0 %v4233_v53  ;;  %v4305_v53 = vld [vmem:[#allocation5 + $0xbd0] ss:$8 sps:$4 sm:$0xff]  }
 0x1a2   :  { %2846 = vmatprep.subr.bf16.mxu0 %v4238_v54  ;;  %v4310_v54 = vld [vmem:[#allocation5 + $0xbe4] ss:$8 sps:$4 sm:$0xff]  }
 0x1a5   :  { %2847 = vmatpush1.bf16.msra.mxu0 %v4236_v55  ;;  %v4308_v55 = vld [vmem:[#allocation5 + $0xbe0] ss:$8 sps:$4 sm:$0xff]  }
 0x1a6   :  { %2848 = vmatprep.subr.bf16.mxu0 %v4241_v56  ;;  %v4313_v56 = vld [vmem:[#allocation5 + $0xbf4] ss:$8 sps:$4 sm:$0xff]  }
 0x1a9   :  { %2849 = vmatpush1.bf16.msra.mxu0 %v4239_v57  ;;  %v4311_v57 = vld [vmem:[#allocation5 + $0xbf0] ss:$8 sps:$4 sm:$0xff]  }
 0x1aa   :  { %2850 = vmatprep.subr.bf16.mxu0 %v4244_v58  ;;  %v94_v58 = vld [vmem:[#allocation2 + $0xb0] sm:$0xff] }
 0x1ad   :  { %2851 = vmatpush1.bf16.msra.mxu0 %v4242_v59  ;;  %v118_v59 = vpack.c.bf16 %v94_v58, %v94_v58 }
 0x1ae   :  { %2852 = vmatprep.subr.bf16.mxu0 %v4247_v60  ;;  %v4326_v60 = vld [vmem:[#allocation7 + $0x70] sm:$0xff]  }
 0x1af   :  { %3646 = vmatprep.subr.bf16.mxu1 %v4326_v60 }
 0x1b1   :  { %2853 = vmatpush1.bf16.msra.mxu0 %v4245_v61 }
 0x1b2   :  { %2854 = vmatprep.subr.bf16.mxu0 %v4250_v62  ;;  %v4327_v62 = vld [vmem:[#allocation7 + $0x30] sm:$0xff]  }
 0x1b3   :  { %3647 = vmatpush3.bf16.msra.mxu1 %v4327_v62 }
 0x1b5   :  { %2855 = vmatpush1.bf16.msra.mxu0 %v4248_v63 }
 0x1b6   :  { %2856 = vmatprep.subr.bf16.mxu0 %v4253_v0 }
 0x1b9   :  { %2857 = vmatpush1.bf16.msra.mxu0 %v4251_v1 }
 0x1ba   :  { %2858 = vmatprep.subr.bf16.mxu0 %v4256_v2  ;;  %v4328_v2 = vld [vmem:[#allocation7 + $0x78] sm:$0xff]  }
 0x1bb   :  { %3648 = vmatprep.subr.bf16.mxu1 %v4328_v2 }
 0x1bd   :  { %2859 = vmatpush1.bf16.msra.mxu0 %v4254_v3  ;;  %v4329_v3 = vld [vmem:[#allocation7 + $0x38] sm:$0xff]  }
 0x1be   :  { %2860 = vmatprep.subr.bf16.mxu0 %v4259_v4  ;;  %3649 = vmatpush3.bf16.msra.mxu1 %v4329_v3  ;;  %v4468_v4 = vmov 0.0  }
 0x1bf   :  { %3665 = vmatprep.subr.bf16.mxu1 %v4468_v4 }
 0x1c1   :  { %2861 = vmatpush1.bf16.msra.mxu0 %v4257_v5 }
 0x1c2   :  { %2862 = vmatprep.subr.bf16.mxu0 %v4262_v6 }
 0x1c5   :  { %2863 = vmatpush1.bf16.msra.mxu0 %v4260_v7 }
 0x1c6   :  { %2864 = vmatprep.subr.bf16.mxu0 %v4265_v8 }
 0x1c9   :  { %2865 = vmatpush1.bf16.msra.mxu0 %v4263_v9 }
 0x1ca   :  { %2875 = vmatprep.subr.bf16.mxu0 %v4268_v11 }
 0x1cc   :  { %2867 = vmatmul.mubr.bf16.vlgmr.msra.gmra.mrb[0].mxu0 %v116_v13 }
 0x1cd   :  { %2876 = vmatpush1.bf16.msra.mxu0 %v4266_v14  ;;  %2907 = vmatprep.mubr.bf16.mxu0 %v119_v15  ;;  %v4330_v14 = vld [vmem:[#allocation8] sm:$0xff]  }
 0x1ce   :  { %2877 = vmatprep.subr.bf16.mxu0 %v4271_v16  ;;  %v4331_v16 = vld [vmem:[#allocation8 + $0x8] sm:$0xff]  }
 0x1d1   :  { %2878 = vmatpush1.bf16.msra.mxu0 %v4269_v17  ;;  %v4332_v17 = vld [vmem:[#allocation8 + $0x10] sm:$0xff]  }
 0x1d2   :  { %2879 = vmatprep.subr.bf16.mxu0 %v4274_v18  ;;  %v4333_v18 = vld [vmem:[#allocation8 + $0x18] sm:$0xff]  }
 0x1d5   :  { %2880 = vmatpush1.bf16.msra.mxu0 %v4272_v19  ;;  %v4334_v19 = vld [vmem:[#allocation8 + $0x20] sm:$0xff]  }
 0x1d6   :  { %2881 = vmatprep.subr.bf16.mxu0 %v4277_v20  ;;  %v4335_v20 = vld [vmem:[#allocation8 + $0x28] sm:$0xff]  }
 0x1d9   :  { %2882 = vmatpush1.bf16.msra.mxu0 %v4275_v21  ;;  %v4336_v21 = vld [vmem:[#allocation8 + $0x30] sm:$0xff]  }
 0x1da   :  { %2883 = vmatprep.subr.bf16.mxu0 %v4280_v22  ;;  %v4337_v22 = vld [vmem:[#allocation8 + $0x38] sm:$0xff]  }
 0x1dd   :  { %2884 = vmatpush1.bf16.msra.mxu0 %v4278_v23 }
 0x1de   :  { %2885 = vmatprep.subr.bf16.mxu0 %v4283_v24 }
 0x1e1   :  { %2886 = vmatpush1.bf16.msra.mxu0 %v4281_v25 }
 0x1e2   :  { %2887 = vmatprep.subr.bf16.mxu0 %v4286_v26 }
 0x1e5   :  { %2888 = vmatpush1.bf16.msra.mxu0 %v4284_v27 }
 0x1e6   :  { %2889 = vmatprep.subr.bf16.mxu0 %v4289_v28 }
 0x1e9   :  { %2890 = vmatpush1.bf16.msra.mxu0 %v4287_v32 }
 0x1ea   :  { %2891 = vmatprep.subr.bf16.mxu0 %v4292_v34 }
 0x1ed   :  { %2892 = vmatpush1.bf16.msra.mxu0 %v4290_v36 }
 0x1ee   :  { %2893 = vmatprep.subr.bf16.mxu0 %v4295_v38 }
 0x1f1   :  { %2894 = vmatpush1.bf16.msra.mxu0 %v4293_v40 }
 0x1f2   :  { %2895 = vmatprep.subr.bf16.mxu0 %v4298_v42 }
 0x1f5   :  { %2896 = vmatpush1.bf16.msra.mxu0 %v4296_v44 }
 0x1f6   :  { %2897 = vmatprep.subr.bf16.mxu0 %v4301_v46 }
 0x1f9   :  { %2898 = vmatpush1.bf16.msra.mxu0 %v4299_v48 }
 0x1fa   :  { %2899 = vmatprep.subr.bf16.mxu0 %v4304_v50 }
 0x1fd   :  { %2900 = vmatpush1.bf16.msra.mxu0 %v4302_v51 }
 0x1fe   :  { %2901 = vmatprep.subr.bf16.mxu0 %v4307_v52 }
 0x201   :  { %2902 = vmatpush1.bf16.msra.mxu0 %v4305_v53 }
 0x202   :  { %2903 = vmatprep.subr.bf16.mxu0 %v4310_v54 }
 0x205   :  { %2904 = vmatpush1.bf16.msra.mxu0 %v4308_v55 }
 0x206   :  { %2905 = vmatprep.subr.bf16.mxu0 %v4313_v56 }
 0x209   :  { %2906 = vmatpush1.bf16.msra.mxu0 %v4311_v57 }
 0x20c   :  { %2908 = vmatmul.mubr.bf16.vlgmr.msra.gmra.mrb[0].mxu0 %v118_v59 }
 0x25e   :  { %v2622_v61 = vpop.f32.mrb[0].mxu1 }
 0x25f   :  { %v2624_v63 = vpop.f32.mrb[1].mxu1 }
 0x260   :  { %v2626_v0 = vpop.f32.mrb[2].mxu1 }
 0x261   :  { %v2627_v1 = vpop.f32.mrb[3].mxu1 }
 0x2df   :  { %v2909_v5 = vpop.f32.mrb[0].mxu0 }
 0x2e0   :  { %v3685_v6 = vadd.f32 %v2909_v5, %v2622_v61  ;;  %v2911_v7 = vpop.f32.mrb[1].mxu0 }
 0x2e1   :  { %v3686_v8 = vadd.f32 %v2911_v7, %v2624_v63  ;;  %v2913_v9 = vpop.f32.mrb[2].mxu0 }
 0x2e2   :  { %v2916_v10 = vmax.f32 %v3685_v6, 0.0  ;;  %v2914_v11 = vpop.f32.mrb[3].mxu0 }
 0x2e3   :  { %v2917_v12 = vmax.f32 %v3686_v8, 0.0 }
 0x2e4   :  { %v2918_v15 = vpack.c.bf16 %v2916_v10, %v2916_v10 }
 0x2e5   :  { %v2919_v13 = vpack.c.bf16 %v2917_v12, %v2917_v12 }
 0x2e7   :  { %3080 = vmatprep.mubr.bf16.mxu1 %v2919_v13 }
 0x2e8   :  { %3081 = vmatmul.mubr.bf16.vlgmr.msra.gmra.mrb[4].mxu1 %v2918_v15 }
 0x2e9   :  { %3666 = vmatpush3.bf16.msra.mxu1 %v4330_v14  ;;  %3681 = vmatprep.mubr.msk.bf16.mxu1 %vm4469_vm0, %v4468_v4 }
 0x2ea   :  { %3667 = vmatprep.subr.bf16.mxu1 %v4468_v4 }
 0x2ed   :  { %3668 = vmatpush3.bf16.msra.mxu1 %v4331_v16 }
 0x2ee   :  { %3669 = vmatprep.subr.bf16.mxu1 %v4468_v4 }
 0x2f1   :  { %3670 = vmatpush3.bf16.msra.mxu1 %v4332_v17 }
 0x2f2   :  { %3671 = vmatprep.subr.bf16.mxu1 %v4468_v4 }
 0x2f5   :  { %3672 = vmatpush3.bf16.msra.mxu1 %v4333_v18 }
 0x2f6   :  { %3673 = vmatprep.subr.bf16.mxu1 %v4468_v4 }
 0x2f9   :  { %3674 = vmatpush3.bf16.msra.mxu1 %v4334_v19 }
 0x2fa   :  { %3675 = vmatprep.subr.bf16.mxu1 %v4468_v4 }
 0x2fd   :  { %3676 = vmatpush3.bf16.msra.mxu1 %v4335_v20 }
 0x2fe   :  { %3677 = vmatprep.subr.bf16.mxu1 %v4468_v4 }
 0x301   :  { %3678 = vmatpush3.bf16.msra.mxu1 %v4336_v21 }
 0x302   :  { %3679 = vmatprep.subr.bf16.mxu1 %v4468_v4 }
 0x305   :  { %3680 = vmatpush3.bf16.msra.mxu1 %v4337_v22 }
 0x3bb   :  { %v3650_v23 = vpop.f32.mrb[4].mxu1 }
 0x3bc   :  { %v3651_v24 = vpop.f32.mrb[5].mxu1 }
 0x3bd   :  { %v3652_v25 = vadd.f32 %v3651_v24, %v3650_v23  ;;  %v3653_v26 = vpop.f32.mrb[6].mxu1 }
 0x3be   :  { %v3654_v27 = vpop.f32.mrb[7].mxu1 }
 0x3bf   :  { %v3088_v28 = vmax.f32 %v3652_v25, 0.0 }
 0x3c1   :  { %v3089_v29 = vpack.c.bf16 %v3088_v28, %v3088_v28 }
 0x3c3   :  { %3682 = vmatmul.mubr.bf16.vlgmr.msra.gmra.mrb[8].mxu1 %v3089_v29 }
 0x496   :  { %v3188_v32 = vpop.f32.mrb[8].mxu1 }
 0x497   :  { %v3683_v33 = vpop.f32.mrb[9].mxu1  ;;  %v3197_v34 = vsel %vm3196_vm1, %v3188_v32, -1e+30 }
 0x498   :  { %3198 = vmax.xlane.f32.xlu0 %v3197_v34  ;;  %v3191_v35 = vpop.f32.mrb[10].mxu1 }
 0x499   :  { %v3684_v36 = vpop.f32.mrb[11].mxu1 }
 0x525   :  { %v3199_v37 = vpop.xlane.xlu0 %3198 }
 0x526   :  { %v3200_v38 = vsub.f32 %v3197_v34, %v3199_v37 }
 0x528   :  { %v3201_v39 = vmul.f32 1.442695, %v3200_v38 }
 0x52a   :  { %4338 = vpow2.f32 %v3201_v39 }
 0x534   :  { %v4339_v40 = vpop.eup %4338 }
 0x535   :  { %3203 = vadd.xlane.f32.xlu0 %v4339_v40 }
 0x5c2   :  { %v3204_v41 = vpop.xlane.xlu0 %3203 }
 0x5c3   :  { %4340 = vlog2.f32 %v3204_v41 }
 0x5cd   :  { %v4341_v42 = vpop.eup %4340 }
 0x5ce   :  { %v3206_v43 = vmul.f32 0.6931472, %v4341_v42 }
 0x5d0   :  { %v3207_v44 = vsub.f32 %v3200_v38, %v3206_v43 }
 0x5d2   :  { %3208 = vst [vmem:[#allocation10] sm:$0xff] %v3207_v44 }
 0x5d3   :  { %4441 = shalt.err (!%p4438_p8)
}
 0x5d4   :  { %s4442_s15 = scalar_lea.hbm %s4560_s4, 128 }
 0x5d5   :  { %p4443_p9 = scmp.ne.s32.totalorder %s4560_s4, %s4442_s15  ;;  %p4446_p10 = scmp.lt.u32.totalorder %s4442_s15, %s4560_s4 }
 0x5d7   :  { %p4448_p11 = pnand %p4446_p10, %p4443_p9 }
 0x5d9   :  { %4451 = shalt.err (!%p4448_p11)
}
 0x5da   :  { %3218 = dma.vmem_to_hbm [thread:$0]  %s3216_s12, 128, %s4560_s4, [#allocation4]  }
 0x5db   :  { %4458 = dma.done.wait [#allocation4], 128  }
 0x5dc   :  { %4459 = vsyncadd [#allocation4], 4294967168 }
 0x5dd   :  { %3222 = vsyncpa [#allocation3], 1 }
 0x5de   :  { %3223 = vsyncpa [#allocation6], 1 }
 0x5df   :  { %3224 = vsyncpa [#allocation9], 1 }
 0x5e0   :  { %3225 = vsyncpa [#allocation4], 1 }

</bundles_post_ra>
